<compile_context>
chip_gen: v7x
topology: tpu7x:2x2x1
jax: 0.10.0
libtpu: 0.0.40
codegen_flags: <defaults>
</compile_context>

<pallas_src>
import functools
import math

import jax
import jax.numpy as jnp
from jax.experimental import pallas as pl
from jax.experimental.pallas import tpu as pltpu


MATMUL_DTYPE = jnp.bfloat16   # MXU inputs / activation storage between kernels
LN_EPS = 1e-12


# ----------------------------------------------------------------------------
# shared math helpers (used identically by kernels and by the pure-JAX ref)
# ----------------------------------------------------------------------------
def _gelu(x):
    # TODO(synk): pytorch_pretrained_bert uses exact erf-gelu; tanh approximation
    # used here for guaranteed TPU (EUP) lowering (~1e-3 divergence).
    return 0.5 * x * (1.0 + jnp.tanh(0.7978845608028654 * (x + 0.044715 * x * x * x)))


def _layernorm(x, g, b, eps=LN_EPS):
    mean = jnp.mean(x, axis=-1, keepdims=True)
    c = x - mean
    var = jnp.mean(c * c, axis=-1, keepdims=True)
    return c * jax.lax.rsqrt(var + eps) * g + b


# ----------------------------------------------------------------------------
# generation-aware compiler / tiling knobs
# ----------------------------------------------------------------------------
@functools.lru_cache(maxsize=None)
def _vmem_limit_bytes():
    cap = 64 * 1024 * 1024
    try:
        info = pltpu.get_tpu_info()
        cap = int(getattr(info, "vmem_capacity_bytes", cap))
    except Exception:
        pass
    # ~3/4 of physical VMEM: ~96 MiB on v5e/v6e (128 MiB), ~48 MiB on v7x (64 MiB)
    return min((3 * cap) // 4, 100 * 1024 * 1024)


def _row_tile_target():
    # bigger row tiles on 128-MiB-VMEM generations, conservative on v7x
    return 512 if _vmem_limit_bytes() >= 80 * 1024 * 1024 else 256


def _compiler_params(semantics):
    return pltpu.CompilerParams(
        dimension_semantics=semantics,
        vmem_limit_bytes=_vmem_limit_bytes(),
    )


def _row_plan(n):
    """Return (padded_n, row_tile).

    Small n -> one full-extent block. Otherwise pick a divisor of n that is a
    multiple of 8 and <= the generation-aware target; if none exists, pad n up
    to a multiple of the target (no single-huge-block fallback).
    """
    target = _row_tile_target()
    if n <= target:
        return n, n
    for tm in range(target, 7, -8):
        if n % tm == 0:
            return n, tm
    pad_n = ((n + target - 1) // target) * target
    return pad_n, target


# ----------------------------------------------------------------------------
# Buffered(1) capability probe (single-buffer constant-index weights)
# ----------------------------------------------------------------------------
def _probe_buffered_support():
    try:
        def k(x_ref, w_ref, o_ref):
            o_ref[...] = x_ref[...] + w_ref[...]

        x = jnp.arange(16 * 128, dtype=jnp.float32).reshape(16, 128)
        w = 0.5 * jnp.arange(8 * 128, dtype=jnp.float32).reshape(8, 128)
        out = pl.pallas_call(
            k,
            out_shape=jax.ShapeDtypeStruct((16, 128), jnp.float32),
            grid=(2,),
            in_specs=[
                pl.BlockSpec((8, 128), lambda i: (i, 0)),
                pl.BlockSpec((8, 128), lambda i: (0, 0),
                             pipeline_mode=pl.Buffered(1)),
            ],
            out_specs=pl.BlockSpec((8, 128), lambda i: (i, 0)),
        )(x, w)
        jax.block_until_ready(out)
        return bool(jnp.allclose(out, x + jnp.tile(w, (2, 1))))
    except Exception:
        return False


_BUFFERED_WEIGHTS = _probe_buffered_support()


def _const_spec(block_shape):
    """BlockSpec for an operand whose block index is constant (weights/biases)."""
    index_map = lambda *_: (0,) * len(block_shape)
    if _BUFFERED_WEIGHTS:
        return pl.BlockSpec(block_shape, index_map, pipeline_mode=pl.Buffered(1))
    return pl.BlockSpec(block_shape, index_map)


# ----------------------------------------------------------------------------
# Kernel 1: LayerNorm (embedding LN, no residual input)
# ----------------------------------------------------------------------------
def _ln_kernel(x_ref, g_ref, b_ref, o_ref, *, eps):
    y = _layernorm(x_ref[...].astype(jnp.float32), g_ref[...], b_ref[...], eps)
    o_ref[...] = y.astype(o_ref.dtype)


def pallas_layernorm(x, gamma, beta, *, out_dtype, eps=LN_EPS):
    N, H = x.shape
    Np, TM = _row_plan(N)
    xp = x if Np == N else jnp.pad(x, ((0, Np - N), (0, 0)))
    out = pl.pallas_call(
        functools.partial(_ln_kernel, eps=eps),
        out_shape=jax.ShapeDtypeStruct((Np, H), out_dtype),
        grid_spec=pltpu.PrefetchScalarGridSpec(
            num_scalar_prefetch=0,
            grid=(Np // TM,),
            in_specs=[
                pl.BlockSpec((TM, H), lambda i: (i, 0)),
                _const_spec((1, H)),
                _const_spec((1, H)),
            ],
            out_specs=pl.BlockSpec((TM, H), lambda i: (i, 0)),
        ),
        compiler_params=_compiler_params(("parallel",)),
    )(xp, gamma, beta)
    return out if Np == N else out[:N]


# ----------------------------------------------------------------------------
# Kernel 2: attention block — fused QKV projection + per-batch MHSA +
#           output proj + residual + LN. Heads split inside the kernel;
#           per-head context written into a lane-dense VMEM scratch [S, H].
# ----------------------------------------------------------------------------
def _attn_block_kernel(x_ref, bias_ref, wqkv_ref, bqkv_ref, wo_ref, bo_ref,
                       g_ref, beta_ref, o_ref, ctx_ref, *, num_heads, eps):
    H = wo_ref.shape[0]
    hd = H // num_heads
    S = x_ref.shape[1]
    scale = 1.0 / math.sqrt(hd)

    x = x_ref[0]                                       # [S, H] bf16 (also residual)

    # fused QKV projection on the MXU, f32 accumulation
    qkv = jnp.dot(x, wqkv_ref[...], preferred_element_type=jnp.float32) + bqkv_ref[...]
    # fold the 1/sqrt(hd) scale into q once (not once per head)
    q_all = (qkv[:, :H] * scale).astype(x.dtype)
    k_all = qkv[:, H:2 * H].astype(x.dtype)
    v_all = qkv[:, 2 * H:].astype(x.dtype)

    # hoist the [1,S] -> [S,S] additive-mask broadcast out of the head loop
    bias = jnp.broadcast_to(bias_ref[0], (S, S))       # f32

    # TODO(synk): odd-head slices start at hd-lane offsets (not 128-aligned);
    # permuting wqkv columns at weight-prep time would avoid lane relayouts if
    # profiling shows XLU saturation.
    for h in range(num_heads):
        sl = slice(h * hd, (h + 1) * hd)
        q = q_all[:, sl]
        k = k_all[:, sl]
        v = v_all[:, sl]
        # q @ k^T without materializing a transpose
        s = jax.lax.dot_general(q, k, (((1,), (1,)), ((), ())),
                                preferred_element_type=jnp.float32) + bias
        m = jnp.max(s, axis=-1, keepdims=True)
        p = jnp.exp(s - m)
        p = p * pl.reciprocal(jnp.sum(p, axis=-1, keepdims=True))
        ctx_ref[:, sl] = jnp.dot(p.astype(v.dtype), v,
                                 preferred_element_type=jnp.float32
                                 ).astype(ctx_ref.dtype)

    ctx = ctx_ref[...]                                  # [S, H] bf16, lane-dense
    attn_out = jnp.dot(ctx, wo_ref[...], preferred_element_type=jnp.float32) + bo_ref[...]
    y = _layernorm(attn_out + x.astype(jnp.float32), g_ref[...], beta_ref[...], eps)
    o_ref[0] = y.astype(o_ref.dtype)


def pallas_attention_block(x, bias, wqkv, bqkv, wo, bo, g, beta, *, B, S,
                           num_heads, eps=LN_EPS):
    N, H = x.shape
    x3 = x.reshape(B, S, H)
    out = pl.pallas_call(
        functools.partial(_attn_block_kernel, num_heads=num_heads, eps=eps),
        out_shape=jax.ShapeDtypeStruct((B, S, H), x.dtype),
        grid_spec=pltpu.PrefetchScalarGridSpec(
            num_scalar_prefetch=0,
            grid=(B,),
            in_specs=[
                pl.BlockSpec((1, S, H), lambda b: (b, 0, 0)),
                pl.BlockSpec((1, 1, S), lambda b: (b, 0, 0)),
                _const_spec((H, 3 * H)),
                _const_spec((1, 3 * H)),
                _const_spec((H, H)),
                _const_spec((1, H)),
                _const_spec((1, H)),
                _const_spec((1, H)),
            ],
            out_specs=pl.BlockSpec((1, S, H), lambda b: (b, 0, 0)),
            scratch_shapes=[pltpu.VMEM((S, H), x.dtype)],
        ),
        compiler_params=_compiler_params(("parallel",)),
    )(x3, bias, wqkv, bqkv, wo, bo, g, beta)
    return out.reshape(N, H)


# ----------------------------------------------------------------------------
# Kernel 3: fused FFN block — wi + gelu + wo2 + residual + LN
# ----------------------------------------------------------------------------
def _ffn_block_kernel(x_ref, wi_ref, bi_ref, wo2_ref, bo2_ref, g_ref, beta_ref,
                      o_ref, *, eps):
    x = x_ref[...]
    inter = jnp.dot(x, wi_ref[...], preferred_element_type=jnp.float32) + bi_ref[...]
    inter = _gelu(inter).astype(wi_ref.dtype)     # bf16 for the second MXU dot
    ffn = jnp.dot(inter, wo2_ref[...], preferred_element_type=jnp.float32) + bo2_ref[...]
    y = _layernorm(ffn + x.astype(jnp.float32), g_ref[...], beta_ref[...], eps)
    o_ref[...] = y.astype(o_ref.dtype)


def pallas_ffn_block(x, wi, bi, wo2, bo2, g, beta, *, eps=LN_EPS):
    N, H = x.shape
    I = wi.shape[1]
    Np, TM = _row_plan(N)
    xp = x if Np == N else jnp.pad(x, ((0, Np - N), (0, 0)))
    out = pl.pallas_call(
        functools.partial(_ffn_block_kernel, eps=eps),
        out_shape=jax.ShapeDtypeStruct((Np, H), x.dtype),
        grid_spec=pltpu.PrefetchScalarGridSpec(
            num_scalar_prefetch=0,
            grid=(Np // TM,),
            in_specs=[
                pl.BlockSpec((TM, H), lambda i: (i, 0)),
                _const_spec((H, I)),
                _const_spec((1, I)),
                _const_spec((I, H)),
                _const_spec((1, H)),
                _const_spec((1, H)),
                _const_spec((1, H)),
            ],
            out_specs=pl.BlockSpec((TM, H), lambda i: (i, 0)),
        ),
        compiler_params=_compiler_params(("parallel",)),
    )(xp, wi, bi, wo2, bo2, g, beta)
    return out if Np == N else out[:N]


# ----------------------------------------------------------------------------
# Parameters (deterministic synthetic init — shapes follow BertConfig)
# ----------------------------------------------------------------------------
def init_params(key, cfg):
    H, I = cfg["hidden"], cfg["intermediate"]

    def norm(k, shape, dtype=jnp.float32):
        return (0.02 * jax.random.normal(k, shape, dtype=jnp.float32)).astype(dtype)

    keys = iter(jax.random.split(key, 8 + 8 * cfg["layers"]))
    params = {
        "word_emb": norm(next(keys), (cfg["vocab"], H)),
        "pos_emb": norm(next(keys), (cfg["max_pos"], H)),
        "type_emb": norm(next(keys), (cfg["type_vocab"], H)),
        "emb_ln_g": jnp.ones((1, H), jnp.float32),
        "emb_ln_b": jnp.zeros((1, H), jnp.float32),
        "layers": [],
    }
    for _ in range(cfg["layers"]):
        lp = {
            # fused [q|k|v] projection, bf16 for the MXU
            "wqkv": norm(next(keys), (H, 3 * H), MATMUL_DTYPE),
            "bqkv": jnp.zeros((1, 3 * H), jnp.float32),
            "wo": norm(next(keys), (H, H), MATMUL_DTYPE),
            "bo": jnp.zeros((1, H), jnp.float32),
            "ln1_g": jnp.ones((1, H), jnp.float32),
            "ln1_b": jnp.zeros((1, H), jnp.float32),
            "wi": norm(next(keys), (H, I), MATMUL_DTYPE),
            "bi": jnp.zeros((1, I), jnp.float32),
            "wo2": norm(next(keys), (I, H), MATMUL_DTYPE),
            "bo2": jnp.zeros((1, H), jnp.float32),
            "ln2_g": jnp.ones((1, H), jnp.float32),
            "ln2_b": jnp.zeros((1, H), jnp.float32),
        }
        params["layers"].append(lp)
    return params


# ----------------------------------------------------------------------------
# Forward pass (Pallas hot path, plain-JAX glue for lookups / gather tail)
# ----------------------------------------------------------------------------
def bert_embedder_forward(params, input_ids, alignments, cfg,
                          keys=("all", "embeddings"), attention_mask=None):
    B, S = input_ids.shape
    H = cfg["hidden"]
    N = B * S

    # BertEmbeddings: word + position + token_type (all-zero type ids), LayerNorm.
    we = params["word_emb"][input_ids]                                  # [B,S,H]
    pe = params["pos_emb"][jnp.arange(S)][None, :, :]                   # [1,S,H]
    te = params["type_emb"][jnp.zeros((B, S), jnp.int32)]               # [B,S,H]
    emb = (we + pe + te).astype(jnp.float32).reshape(N, H)
    x = pallas_layernorm(emb, params["emb_ln_g"], params["emb_ln_b"],
                         out_dtype=MATMUL_DTYPE)

    # attention_mask defaults to ones (as in the torch module when mask is None);
    # sequences shorter than S would need a real mask from bert_tokenize.
    if attention_mask is None:
        attention_mask = jnp.ones((B, S), jnp.float32)
    bias = ((1.0 - attention_mask.astype(jnp.float32)) * -10000.0).reshape(B, 1, S)

    # keep only the layers we actually need (last 4 unless 'all' is requested)
    keep = cfg["layers"] if "all" in keys else min(4, cfg["layers"])
    encoded = []
    for lp in params["layers"]:
        # x is read once (QKV + residual) and written once per fused kernel:
        x = pallas_attention_block(x, bias, lp["wqkv"], lp["bqkv"],
                                   lp["wo"], lp["bo"],
                                   lp["ln1_g"], lp["ln1_b"],
                                   B=B, S=S, num_heads=cfg["heads"])
        x = pallas_ffn_block(x, lp["wi"], lp["bi"], lp["wo2"], lp["bo2"],
                             lp["ln2_g"], lp["ln2_b"])
        encoded.append(x)
        if len(encoded) > keep:
            encoded.pop(0)

    # torch: indices = alignments.unsqueeze(-1).repeat(1,1,H); w.gather(1, indices)
    A = alignments.shape[1]
    idx = jnp.broadcast_to(alignments[:, :, None], (B, A, H))
    gathered = [jnp.take_along_axis(xl.astype(jnp.float32).reshape(B, S, H), idx, axis=1)
                for xl in encoded]

    out = {}
    if "all" in keys:
        out["all"] = gathered
    if "embeddings" in keys:
        # non-finetune path: concat last 4 encoder layers along hidden dim
        out["embeddings"] = jnp.concatenate(gathered[-4:], axis=-1)
    return out


# ----------------------------------------------------------------------------
# Pure-JAX reference (same math & same bf16 rounding points, no Pallas)
# ----------------------------------------------------------------------------
def reference_forward(params, input_ids, alignments, cfg):
    B, S = input_ids.shape
    H, nH = cfg["hidden"], cfg["heads"]
    hd = H // nH
    N = B * S

    we = params["word_emb"][input_ids]
    pe = params["pos_emb"][jnp.arange(S)][None]
    te = params["type_emb"][jnp.zeros((B, S), jnp.int32)]
    emb = (we + pe + te).astype(jnp.float32).reshape(N, H)
    x = _layernorm(emb, params["emb_ln_g"], params["emb_ln_b"]).astype(MATMUL_DTYPE)

    attn_mask = jnp.ones((B, S), jnp.float32)
    bias = ((1.0 - attn_mask) * -10000.0).reshape(B, 1, 1, S)

    layers = []
    for lp in params["layers"]:
        qkv = (jnp.dot(x, lp["wqkv"], preferred_element_type=jnp.float32)
               + lp["bqkv"]).astype(MATMUL_DTYPE)
        qkv5 = qkv.reshape(B, S, 3, nH, hd)
        q = qkv5[:, :, 0].transpose(0, 2, 1, 3)
        k = qkv5[:, :, 1].transpose(0, 2, 1, 3)
        v = qkv5[:, :, 2].transpose(0, 2, 1, 3)
        s = jnp.einsum("bhqd,bhkd->bhqk", q, k,
                       preferred_element_type=jnp.float32) / math.sqrt(hd) + bias
        p = jax.nn.softmax(s, axis=-1)
        ctx = jnp.einsum("bhqk,bhkd->bhqd", p.astype(MATMUL_DTYPE), v,
                         preferred_element_type=jnp.float32)
        ctx = ctx.transpose(0, 2, 1, 3).reshape(N, H).astype(MATMUL_DTYPE)
        attn = jnp.dot(ctx, lp["wo"], preferred_element_type=jnp.float32) + lp["bo"]
        x = _layernorm(attn + x.astype(jnp.float32),
                       lp["ln1_g"], lp["ln1_b"]).astype(MATMUL_DTYPE)
        inter = jnp.dot(x, lp["wi"], preferred_element_type=jnp.float32) + lp["bi"]
        inter = _gelu(inter).astype(MATMUL_DTYPE)
        ffn = jnp.dot(inter, lp["wo2"], preferred_element_type=jnp.float32) + lp["bo2"]
        x = _layernorm(ffn + x.astype(jnp.float32),
                       lp["ln2_g"], lp["ln2_b"]).astype(MATMUL_DTYPE)
        layers.append(x.astype(jnp.float32).reshape(B, S, H))

    A = alignments.shape[1]
    idx = jnp.broadcast_to(alignments[:, :, None], (B, A, H))
    all_layers = [jnp.take_along_axis(w, idx, axis=1) for w in layers]
    return jnp.concatenate(all_layers[-4:], axis=-1)


# ----------------------------------------------------------------------------
if __name__ == "__main__":
    cfg = dict(vocab=100, hidden=32, heads=4, intermediate=64,
               layers=4, max_pos=64, type_vocab=2)
    B, S, A = 2, 8, 5  # batch, (sub)token sequence length, padded word count

    key = jax.random.PRNGKey(0)
    kp, kids, kal = jax.random.split(key, 3)
    params = init_params(kp, cfg)
    input_ids = jax.random.randint(kids, (B, S), 0, cfg["vocab"], dtype=jnp.int32)
    alignments = jax.random.randint(kal, (B, A), 0, S, dtype=jnp.int32)

    fwd = jax.jit(lambda p, ids, al: bert_embedder_forward(p, ids, al, cfg))
    out = fwd(params, input_ids, alignments)
    jax.block_until_ready(out)

    ref = reference_forward(params, input_ids, alignments, cfg)
    assert out["embeddings"].shape == (B, A, 4 * cfg["hidden"])
    assert len(out["all"]) == cfg["layers"]
    max_err = float(jnp.max(jnp.abs(out["embeddings"] - ref)))
    assert jnp.allclose(out["embeddings"], ref, atol=3e-2, rtol=3e-2), \
        f"mismatch vs reference: max abs err {max_err}"

    print("KERNEL_OK")
</pallas_src>

<mosaic_0001>
module attributes {stable_mosaic.version = 11 : i64} {
  func.func @k(%arg0: i32, %arg1: memref<8x128xf32, #tpu.memory_space<vmem>>, %arg2: memref<8x128xf32, #tpu.memory_space<vmem>>, %arg3: memref<8x128xf32, #tpu.memory_space<vmem>>) attributes {dimension_semantics = [#tpu.dimension_semantics<arbitrary>], iteration_bounds = array<i64: 2>, scalar_prefetch = 0 : i64, scratch_operands = 0 : i64, tpu.core_type = #tpu.core_type<tc>, window_params = [{transform_indices = @transform_0, window_bounds = array<i64: 8, 128>}, {pipeline_mode = #tpu.pipeline_mode<synchronous>, transform_indices = @transform_1, window_bounds = array<i64: 8, 128>}, {transform_indices = @transform_2, window_bounds = array<i64: 8, 128>}]} {
    %c0 = arith.constant 0 : index
    %c0_0 = arith.constant 0 : index
    %0 = vector.load %arg1[%c0, %c0_0] : memref<8x128xf32, #tpu.memory_space<vmem>>, vector<8x128xf32>
    %c0_1 = arith.constant 0 : index
    %c0_2 = arith.constant 0 : index
    %1 = vector.load %arg2[%c0_1, %c0_2] : memref<8x128xf32, #tpu.memory_space<vmem>>, vector<8x128xf32>
    %2 = arith.addf %0, %1 : vector<8x128xf32>
    %c0_3 = arith.constant 0 : index
    %c0_4 = arith.constant 0 : index
    %3 = vector.load %arg3[%c0_3, %c0_4] : memref<8x128xf32, #tpu.memory_space<vmem>>, vector<8x128xf32>
    tpu.vector_store %arg3[%c0_3, %c0_4], %2 {strides = array<i32>} : memref<8x128xf32, #tpu.memory_space<vmem>>, vector<8x128xf32>,
    return
  }
  func.func @transform_0(%arg0: i32) -> (i32, i32) {
    %c0_i32 = arith.constant 0 : i32
    %c0_i32_0 = arith.constant 0 : i32
    return %arg0, %c0_i32 : i32, i32
  }
  func.func @transform_1(%arg0: i32) -> (i32, i32) {
    %c0_i32 = arith.constant 0 : i32
    %c0_i32_0 = arith.constant 0 : i32
    %c0_i32_1 = arith.constant 0 : i32
    return %c0_i32, %c0_i32_0 : i32, i32
  }
  func.func @transform_2(%arg0: i32) -> (i32, i32) {
    %c0_i32 = arith.constant 0 : i32
    %c0_i32_0 = arith.constant 0 : i32
    return %arg0, %c0_i32 : i32, i32
  }
}

module attributes {stable_mosaic.version = 11 : i64} {
  func.func @_ln_kernel(%arg0: i32, %arg1: memref<16x32xf32, #tpu.memory_space<vmem>>, %arg2: memref<1x32xf32, #tpu.memory_space<vmem>>, %arg3: memref<1x32xf32, #tpu.memory_space<vmem>>, %arg4: memref<16x32xbf16, #tpu.memory_space<vmem>>) attributes {dimension_semantics = [#tpu.dimension_semantics<parallel>], iteration_bounds = array<i64: 1>, scalar_prefetch = 0 : i64, scratch_operands = 0 : i64, tpu.core_type = #tpu.core_type<tc>, window_params = [{transform_indices = @transform_0, window_bounds = array<i64: 16, 32>}, {pipeline_mode = #tpu.pipeline_mode<synchronous>, transform_indices = @transform_1, window_bounds = array<i64: 1, 32>}, {pipeline_mode = #tpu.pipeline_mode<synchronous>, transform_indices = @transform_2, window_bounds = array<i64: 1, 32>}, {transform_indices = @transform_3, window_bounds = array<i64: 16, 32>}]} {
    %c0 = arith.constant 0 : index
    %c0_0 = arith.constant 0 : index
    %0 = vector.load %arg1[%c0, %c0_0] : memref<16x32xf32, #tpu.memory_space<vmem>>, vector<16x32xf32>
    %c0_1 = arith.constant 0 : index
    %c0_2 = arith.constant 0 : index
    %1 = vector.load %arg2[%c0_1, %c0_2] : memref<1x32xf32, #tpu.memory_space<vmem>>, vector<1x32xf32>
    %c0_3 = arith.constant 0 : index
    %c0_4 = arith.constant 0 : index
    %2 = vector.load %arg3[%c0_3, %c0_4] : memref<1x32xf32, #tpu.memory_space<vmem>>, vector<1x32xf32>
    %cst = arith.constant dense<0.000000e+00> : vector<16xf32>
    %3 = vector.multi_reduction <add>, %0, %cst [1] : vector<16x32xf32> to vector<16xf32>
    %4 = vector.shape_cast %3 : vector<16xf32> to vector<16x1xf32>
    %cst_5 = arith.constant 3.200000e+01 : f32
    %5 = vector.broadcast %cst_5 : f32 to vector<16x1xf32>
    %6 = arith.divf %4, %5 : vector<16x1xf32>
    %7 = vector.broadcast %6 : vector<16x1xf32> to vector<16x32xf32>
    %8 = arith.subf %0, %7 : vector<16x32xf32>
    %9 = arith.mulf %8, %8 : vector<16x32xf32>
    %cst_6 = arith.constant dense<0.000000e+00> : vector<16xf32>
    %10 = vector.multi_reduction <add>, %9, %cst_6 [1] : vector<16x32xf32> to vector<16xf32>
    %11 = vector.shape_cast %10 : vector<16xf32> to vector<16x1xf32>
    %cst_7 = arith.constant 3.200000e+01 : f32
    %12 = vector.broadcast %cst_7 : f32 to vector<16x1xf32>
    %13 = arith.divf %11, %12 : vector<16x1xf32>
    %cst_8 = arith.constant 9.99999996E-13 : f32
    %14 = vector.broadcast %cst_8 : f32 to vector<16x1xf32>
    %15 = arith.addf %13, %14 : vector<16x1xf32>
    %16 = math.rsqrt %15 : vector<16x1xf32>
    %17 = vector.broadcast %16 : vector<16x1xf32> to vector<16x32xf32>
    %18 = arith.mulf %8, %17 : vector<16x32xf32>
    %19 = vector.broadcast %1 : vector<1x32xf32> to vector<16x32xf32>
    %20 = arith.mulf %18, %19 : vector<16x32xf32>
    %21 = vector.broadcast %2 : vector<1x32xf32> to vector<16x32xf32>
    %22 = arith.addf %20, %21 : vector<16x32xf32>
    %23 = arith.truncf %22 : vector<16x32xf32> to vector<16x32xbf16>
    %c0_9 = arith.constant 0 : index
    %c0_10 = arith.constant 0 : index
    %24 = vector.load %arg4[%c0_9, %c0_10] : memref<16x32xbf16, #tpu.memory_space<vmem>>, vector<16x32xbf16>
    tpu.vector_store %arg4[%c0_9, %c0_10], %23 {strides = array<i32>} : memref<16x32xbf16, #tpu.memory_space<vmem>>, vector<16x32xbf16>,
    return
  }
  func.func @transform_0(%arg0: i32) -> (i32, i32) {
    %c0_i32 = arith.constant 0 : i32
    %c0_i32_0 = arith.constant 0 : i32
    return %arg0, %c0_i32 : i32, i32
  }
  func.func @transform_1(%arg0: i32) -> (i32, i32) {
    %c0_i32 = arith.constant 0 : i32
    %c0_i32_0 = arith.constant 0 : i32
    %c0_i32_1 = arith.constant 0 : i32
    return %c0_i32, %c0_i32_0 : i32, i32
  }
  func.func @transform_2(%arg0: i32) -> (i32, i32) {
    %c0_i32 = arith.constant 0 : i32
    %c0_i32_0 = arith.constant 0 : i32
    %c0_i32_1 = arith.constant 0 : i32
    return %c0_i32, %c0_i32_0 : i32, i32
  }
  func.func @transform_3(%arg0: i32) -> (i32, i32) {
    %c0_i32 = arith.constant 0 : i32
    %c0_i32_0 = arith.constant 0 : i32
    return %arg0, %c0_i32 : i32, i32
  }
}

module attributes {stable_mosaic.version = 11 : i64} {
  func.func @_attn_block_kernel(%arg0: i32, %arg1: memref<1x8x32xbf16, #tpu.memory_space<vmem>>, %arg2: memref<1x1x8xf32, #tpu.memory_space<vmem>>, %arg3: memref<32x96xbf16, #tpu.memory_space<vmem>>, %arg4: memref<1x96xf32, #tpu.memory_space<vmem>>, %arg5: memref<32x32xbf16, #tpu.memory_space<vmem>>, %arg6: memref<1x32xf32, #tpu.memory_space<vmem>>, %arg7: memref<1x32xf32, #tpu.memory_space<vmem>>, %arg8: memref<1x32xf32, #tpu.memory_space<vmem>>, %arg9: memref<1x8x32xbf16, #tpu.memory_space<vmem>>, %arg10: memref<8x32xbf16, #tpu.memory_space<vmem>>) attributes {dimension_semantics = [#tpu.dimension_semantics<parallel>], iteration_bounds = array<i64: 2>, scalar_prefetch = 0 : i64, scratch_operands = 1 : i64, tpu.core_type = #tpu.core_type<tc>, window_params = [{transform_indices = @transform_0, window_bounds = array<i64: 1, 8, 32>}, {transform_indices = @transform_1, window_bounds = array<i64: 1, 1, 8>}, {pipeline_mode = #tpu.pipeline_mode<synchronous>, transform_indices = @transform_2, window_bounds = array<i64: 32, 96>}, {pipeline_mode = #tpu.pipeline_mode<synchronous>, transform_indices = @transform_3, window_bounds = array<i64: 1, 96>}, {pipeline_mode = #tpu.pipeline_mode<synchronous>, transform_indices = @transform_4, window_bounds = array<i64: 32, 32>}, {pipeline_mode = #tpu.pipeline_mode<synchronous>, transform_indices = @transform_5, window_bounds = array<i64: 1, 32>}, {pipeline_mode = #tpu.pipeline_mode<synchronous>, transform_indices = @transform_6, window_bounds = array<i64: 1, 32>}, {pipeline_mode = #tpu.pipeline_mode<synchronous>, transform_indices = @transform_7, window_bounds = array<i64: 1, 32>}, {transform_indices = @transform_8, window_bounds = array<i64: 1, 8, 32>}]} {
    %c0 = arith.constant 0 : index
    %c0_0 = arith.constant 0 : index
    %c0_1 = arith.constant 0 : index
    %0 = vector.load %arg1[%c0, %c0_0, %c0_1] : memref<1x8x32xbf16, #tpu.memory_space<vmem>>, vector<1x8x32xbf16>
    %1 = vector.shape_cast %0 : vector<1x8x32xbf16> to vector<8x32xbf16>
    %c0_2 = arith.constant 0 : index
    %c0_3 = arith.constant 0 : index
    %2 = vector.load %arg3[%c0_2, %c0_3] : memref<32x96xbf16, #tpu.memory_space<vmem>>, vector<32x96xbf16>
    %cst = arith.constant dense<0.000000e+00> : vector<8x96xf32>
    %3 = tpu.matmul %1, %2, %cst {dimension_numbers = #tpu.dot_dimension_numbers<[1], [0], [0], [1], [0, 0, 1, 1], [], []>} : vector<8x32xbf16>, vector<32x96xbf16>, vector<8x96xf32> -> vector<8x96xf32>
    %c0_4 = arith.constant 0 : index
    %c0_5 = arith.constant 0 : index
    %4 = vector.load %arg4[%c0_4, %c0_5] : memref<1x96xf32, #tpu.memory_space<vmem>>, vector<1x96xf32>
    %5 = vector.broadcast %4 : vector<1x96xf32> to vector<8x96xf32>
    %6 = arith.addf %3, %5 : vector<8x96xf32>
    %7 = vector.extract_strided_slice %6 {offsets = [0, 0], sizes = [8, 32], strides = [1, 1]} : vector<8x96xf32> to vector<8x32xf32>
    %cst_6 = arith.constant 0.353553385 : f32
    %8 = vector.broadcast %cst_6 : f32 to vector<8x32xf32>
    %9 = arith.mulf %7, %8 : vector<8x32xf32>
    %10 = arith.truncf %9 : vector<8x32xf32> to vector<8x32xbf16>
    %11 = vector.extract_strided_slice %6 {offsets = [0, 32], sizes = [8, 32], strides = [1, 1]} : vector<8x96xf32> to vector<8x32xf32>
    %12 = arith.truncf %11 : vector<8x32xf32> to vector<8x32xbf16>
    %13 = vector.extract_strided_slice %6 {offsets = [0, 64], sizes = [8, 32], strides = [1, 1]} : vector<8x96xf32> to vector<8x32xf32>
    %14 = arith.truncf %13 : vector<8x32xf32> to vector<8x32xbf16>
    %c0_7 = arith.constant 0 : index
    %c0_8 = arith.constant 0 : index
    %c0_9 = arith.constant 0 : index
    %15 = vector.load %arg2[%c0_7, %c0_8, %c0_9] : memref<1x1x8xf32, #tpu.memory_space<vmem>>, vector<1x1x8xf32>
    %16 = vector.shape_cast %15 : vector<1x1x8xf32> to vector<1x8xf32>
    %17 = vector.shape_cast %16 : vector<1x8xf32> to vector<1x8xf32>
    %18 = vector.broadcast %17 : vector<1x8xf32> to vector<8x8xf32>
    %19 = vector.extract_strided_slice %10 {offsets = [0, 0], sizes = [8, 8], strides = [1, 1]} : vector<8x32xbf16> to vector<8x8xbf16>
    %20 = vector.extract_strided_slice %12 {offsets = [0, 0], sizes = [8, 8], strides = [1, 1]} : vector<8x32xbf16> to vector<8x8xbf16>
    %21 = vector.extract_strided_slice %14 {offsets = [0, 0], sizes = [8, 8], strides = [1, 1]} : vector<8x32xbf16> to vector<8x8xbf16>
    %cst_10 = arith.constant dense<0.000000e+00> : vector<8x8xf32>
    %22 = tpu.matmul %19, %20, %cst_10 {dimension_numbers = #tpu.dot_dimension_numbers<[1], [1], [0], [0], [0, 0, 1, 0], [], []>} : vector<8x8xbf16>, vector<8x8xbf16>, vector<8x8xf32> -> vector<8x8xf32>
    %23 = arith.addf %22, %18 : vector<8x8xf32>
    %cst_11 = arith.constant dense<0xFF800000> : vector<8xf32>
    %24 = vector.multi_reduction <maximumf>, %23, %cst_11 [1] : vector<8x8xf32> to vector<8xf32>
    %25 = vector.shape_cast %24 : vector<8xf32> to vector<8x1xf32>
    %26 = vector.broadcast %25 : vector<8x1xf32> to vector<8x8xf32>
    %27 = arith.subf %23, %26 : vector<8x8xf32>
    %28 = math.exp %27 : vector<8x8xf32>
    %cst_12 = arith.constant dense<0.000000e+00> : vector<8xf32>
    %29 = vector.multi_reduction <add>, %28, %cst_12 [1] : vector<8x8xf32> to vector<8xf32>
    %30 = vector.shape_cast %29 : vector<8xf32> to vector<8x1xf32>
    %31 = tpu.reciprocal %30 : vector<8x1xf32> -> vector<8x1xf32>
    %32 = vector.broadcast %31 : vector<8x1xf32> to vector<8x8xf32>
    %33 = arith.mulf %28, %32 : vector<8x8xf32>
    %34 = arith.truncf %33 : vector<8x8xf32> to vector<8x8xbf16>
    %cst_13 = arith.constant dense<0.000000e+00> : vector<8x8xf32>
    %35 = tpu.matmul %34, %21, %cst_13 {dimension_numbers = #tpu.dot_dimension_numbers<[1], [0], [0], [1], [0, 0, 1, 1], [], []>} : vector<8x8xbf16>, vector<8x8xbf16>, vector<8x8xf32> -> vector<8x8xf32>
    %36 = arith.truncf %35 : vector<8x8xf32> to vector<8x8xbf16>
    %c0_14 = arith.constant 0 : index
    %c0_15 = arith.constant 0 : index
    %37 = vector.load %arg10[%c0_14, %c0_15] : memref<8x32xbf16, #tpu.memory_space<vmem>>, vector<8x8xbf16>
    tpu.vector_store %arg10[%c0_14, %c0_15], %36 {strides = array<i32>} : memref<8x32xbf16, #tpu.memory_space<vmem>>, vector<8x8xbf16>,
    %38 = vector.extract_strided_slice %10 {offsets = [0, 8], sizes = [8, 8], strides = [1, 1]} : vector<8x32xbf16> to vector<8x8xbf16>
    %39 = vector.extract_strided_slice %12 {offsets = [0, 8], sizes = [8, 8], strides = [1, 1]} : vector<8x32xbf16> to vector<8x8xbf16>
    %40 = vector.extract_strided_slice %14 {offsets = [0, 8], sizes = [8, 8], strides = [1, 1]} : vector<8x32xbf16> to vector<8x8xbf16>
    %cst_16 = arith.constant dense<0.000000e+00> : vector<8x8xf32>
    %41 = tpu.matmul %38, %39, %cst_16 {dimension_numbers = #tpu.dot_dimension_numbers<[1], [1], [0], [0], [0, 0, 1, 0], [], []>} : vector<8x8xbf16>, vector<8x8xbf16>, vector<8x8xf32> -> vector<8x8xf32>
    %42 = arith.addf %41, %18 : vector<8x8xf32>
    %cst_17 = arith.constant dense<0xFF800000> : vector<8xf32>
    %43 = vector.multi_reduction <maximumf>, %42, %cst_17 [1] : vector<8x8xf32> to vector<8xf32>
    %44 = vector.shape_cast %43 : vector<8xf32> to vector<8x1xf32>
    %45 = vector.broadcast %44 : vector<8x1xf32> to vector<8x8xf32>
    %46 = arith.subf %42, %45 : vector<8x8xf32>
    %47 = math.exp %46 : vector<8x8xf32>
    %cst_18 = arith.constant dense<0.000000e+00> : vector<8xf32>
    %48 = vector.multi_reduction <add>, %47, %cst_18 [1] : vector<8x8xf32> to vector<8xf32>
    %49 = vector.shape_cast %48 : vector<8xf32> to vector<8x1xf32>
    %50 = tpu.reciprocal %49 : vector<8x1xf32> -> vector<8x1xf32>
    %51 = vector.broadcast %50 : vector<8x1xf32> to vector<8x8xf32>
    %52 = arith.mulf %47, %51 : vector<8x8xf32>
    %53 = arith.truncf %52 : vector<8x8xf32> to vector<8x8xbf16>
    %cst_19 = arith.constant dense<0.000000e+00> : vector<8x8xf32>
    %54 = tpu.matmul %53, %40, %cst_19 {dimension_numbers = #tpu.dot_dimension_numbers<[1], [0], [0], [1], [0, 0, 1, 1], [], []>} : vector<8x8xbf16>, vector<8x8xbf16>, vector<8x8xf32> -> vector<8x8xf32>
    %55 = arith.truncf %54 : vector<8x8xf32> to vector<8x8xbf16>
    %c0_20 = arith.constant 0 : index
    %c8 = arith.constant 8 : index
    %56 = vector.load %arg10[%c0_20, %c8] : memref<8x32xbf16, #tpu.memory_space<vmem>>, vector<8x8xbf16>
    tpu.vector_store %arg10[%c0_20, %c8], %55 {strides = array<i32>} : memref<8x32xbf16, #tpu.memory_space<vmem>>, vector<8x8xbf16>,
    %57 = vector.extract_strided_slice %10 {offsets = [0, 16], sizes = [8, 8], strides = [1, 1]} : vector<8x32xbf16> to vector<8x8xbf16>
    %58 = vector.extract_strided_slice %12 {offsets = [0, 16], sizes = [8, 8], strides = [1, 1]} : vector<8x32xbf16> to vector<8x8xbf16>
    %59 = vector.extract_strided_slice %14 {offsets = [0, 16], sizes = [8, 8], strides = [1, 1]} : vector<8x32xbf16> to vector<8x8xbf16>
    %cst_21 = arith.constant dense<0.000000e+00> : vector<8x8xf32>
    %60 = tpu.matmul %57, %58, %cst_21 {dimension_numbers = #tpu.dot_dimension_numbers<[1], [1], [0], [0], [0, 0, 1, 0], [], []>} : vector<8x8xbf16>, vector<8x8xbf16>, vector<8x8xf32> -> vector<8x8xf32>
    %61 = arith.addf %60, %18 : vector<8x8xf32>
    %cst_22 = arith.constant dense<0xFF800000> : vector<8xf32>
    %62 = vector.multi_reduction <maximumf>, %61, %cst_22 [1] : vector<8x8xf32> to vector<8xf32>
    %63 = vector.shape_cast %62 : vector<8xf32> to vector<8x1xf32>
    %64 = vector.broadcast %63 : vector<8x1xf32> to vector<8x8xf32>
    %65 = arith.subf %61, %64 : vector<8x8xf32>
    %66 = math.exp %65 : vector<8x8xf32>
    %cst_23 = arith.constant dense<0.000000e+00> : vector<8xf32>
    %67 = vector.multi_reduction <add>, %66, %cst_23 [1] : vector<8x8xf32> to vector<8xf32>
    %68 = vector.shape_cast %67 : vector<8xf32> to vector<8x1xf32>
    %69 = tpu.reciprocal %68 : vector<8x1xf32> -> vector<8x1xf32>
    %70 = vector.broadcast %69 : vector<8x1xf32> to vector<8x8xf32>
    %71 = arith.mulf %66, %70 : vector<8x8xf32>
    %72 = arith.truncf %71 : vector<8x8xf32> to vector<8x8xbf16>
    %cst_24 = arith.constant dense<0.000000e+00> : vector<8x8xf32>
    %73 = tpu.matmul %72, %59, %cst_24 {dimension_numbers = #tpu.dot_dimension_numbers<[1], [0], [0], [1], [0, 0, 1, 1], [], []>} : vector<8x8xbf16>, vector<8x8xbf16>, vector<8x8xf32> -> vector<8x8xf32>
    %74 = arith.truncf %73 : vector<8x8xf32> to vector<8x8xbf16>
    %c0_25 = arith.constant 0 : index
    %c16 = arith.constant 16 : index
    %75 = vector.load %arg10[%c0_25, %c16] : memref<8x32xbf16, #tpu.memory_space<vmem>>, vector<8x8xbf16>
    tpu.vector_store %arg10[%c0_25, %c16], %74 {strides = array<i32>} : memref<8x32xbf16, #tpu.memory_space<vmem>>, vector<8x8xbf16>,
    %76 = vector.extract_strided_slice %10 {offsets = [0, 24], sizes = [8, 8], strides = [1, 1]} : vector<8x32xbf16> to vector<8x8xbf16>
    %77 = vector.extract_strided_slice %12 {offsets = [0, 24], sizes = [8, 8], strides = [1, 1]} : vector<8x32xbf16> to vector<8x8xbf16>
    %78 = vector.extract_strided_slice %14 {offsets = [0, 24], sizes = [8, 8], strides = [1, 1]} : vector<8x32xbf16> to vector<8x8xbf16>
    %cst_26 = arith.constant dense<0.000000e+00> : vector<8x8xf32>
    %79 = tpu.matmul %76, %77, %cst_26 {dimension_numbers = #tpu.dot_dimension_numbers<[1], [1], [0], [0], [0, 0, 1, 0], [], []>} : vector<8x8xbf16>, vector<8x8xbf16>, vector<8x8xf32> -> vector<8x8xf32>
    %80 = arith.addf %79, %18 : vector<8x8xf32>
    %cst_27 = arith.constant dense<0xFF800000> : vector<8xf32>
    %81 = vector.multi_reduction <maximumf>, %80, %cst_27 [1] : vector<8x8xf32> to vector<8xf32>
    %82 = vector.shape_cast %81 : vector<8xf32> to vector<8x1xf32>
    %83 = vector.broadcast %82 : vector<8x1xf32> to vector<8x8xf32>
    %84 = arith.subf %80, %83 : vector<8x8xf32>
    %85 = math.exp %84 : vector<8x8xf32>
    %cst_28 = arith.constant dense<0.000000e+00> : vector<8xf32>
    %86 = vector.multi_reduction <add>, %85, %cst_28 [1] : vector<8x8xf32> to vector<8xf32>
    %87 = vector.shape_cast %86 : vector<8xf32> to vector<8x1xf32>
    %88 = tpu.reciprocal %87 : vector<8x1xf32> -> vector<8x1xf32>
    %89 = vector.broadcast %88 : vector<8x1xf32> to vector<8x8xf32>
    %90 = arith.mulf %85, %89 : vector<8x8xf32>
    %91 = arith.truncf %90 : vector<8x8xf32> to vector<8x8xbf16>
    %cst_29 = arith.constant dense<0.000000e+00> : vector<8x8xf32>
    %92 = tpu.matmul %91, %78, %cst_29 {dimension_numbers = #tpu.dot_dimension_numbers<[1], [0], [0], [1], [0, 0, 1, 1], [], []>} : vector<8x8xbf16>, vector<8x8xbf16>, vector<8x8xf32> -> vector<8x8xf32>
    %93 = arith.truncf %92 : vector<8x8xf32> to vector<8x8xbf16>
    %c0_30 = arith.constant 0 : index
    %c24 = arith.constant 24 : index
    %94 = vector.load %arg10[%c0_30, %c24] : memref<8x32xbf16, #tpu.memory_space<vmem>>, vector<8x8xbf16>
    tpu.vector_store %arg10[%c0_30, %c24], %93 {strides = array<i32>} : memref<8x32xbf16, #tpu.memory_space<vmem>>, vector<8x8xbf16>,
    %c0_31 = arith.constant 0 : index
    %c0_32 = arith.constant 0 : index
    %95 = vector.load %arg10[%c0_31, %c0_32] : memref<8x32xbf16, #tpu.memory_space<vmem>>, vector<8x32xbf16>
    %c0_33 = arith.constant 0 : index
    %c0_34 = arith.constant 0 : index
    %96 = vector.load %arg5[%c0_33, %c0_34] : memref<32x32xbf16, #tpu.memory_space<vmem>>, vector<32x32xbf16>
    %cst_35 = arith.constant dense<0.000000e+00> : vector<8x32xf32>
    %97 = tpu.matmul %95, %96, %cst_35 {dimension_numbers = #tpu.dot_dimension_numbers<[1], [0], [0], [1], [0, 0, 1, 1], [], []>} : vector<8x32xbf16>, vector<32x32xbf16>, vector<8x32xf32> -> vector<8x32xf32>
    %c0_36 = arith.constant 0 : index
    %c0_37 = arith.constant 0 : index
    %98 = vector.load %arg6[%c0_36, %c0_37] : memref<1x32xf32, #tpu.memory_space<vmem>>, vector<1x32xf32>
    %99 = vector.broadcast %98 : vector<1x32xf32> to vector<8x32xf32>
    %100 = arith.addf %97, %99 : vector<8x32xf32>
    %101 = arith.extf %1 : vector<8x32xbf16> to vector<8x32xf32>
    %102 = arith.addf %100, %101 : vector<8x32xf32>
    %c0_38 = arith.constant 0 : index
    %c0_39 = arith.constant 0 : index
    %103 = vector.load %arg7[%c0_38, %c0_39] : memref<1x32xf32, #tpu.memory_space<vmem>>, vector<1x32xf32>
    %c0_40 = arith.constant 0 : index
    %c0_41 = arith.constant 0 : index
    %104 = vector.load %arg8[%c0_40, %c0_41] : memref<1x32xf32, #tpu.memory_space<vmem>>, vector<1x32xf32>
    %cst_42 = arith.constant dense<0.000000e+00> : vector<8xf32>
    %105 = vector.multi_reduction <add>, %102, %cst_42 [1] : vector<8x32xf32> to vector<8xf32>
    %106 = vector.shape_cast %105 : vector<8xf32> to vector<8x1xf32>
    %cst_43 = arith.constant 3.200000e+01 : f32
    %107 = vector.broadcast %cst_43 : f32 to vector<8x1xf32>
    %108 = arith.divf %106, %107 : vector<8x1xf32>
    %109 = vector.broadcast %108 : vector<8x1xf32> to vector<8x32xf32>
    %110 = arith.subf %102, %109 : vector<8x32xf32>
    %111 = arith.mulf %110, %110 : vector<8x32xf32>
    %cst_44 = arith.constant dense<0.000000e+00> : vector<8xf32>
    %112 = vector.multi_reduction <add>, %111, %cst_44 [1] : vector<8x32xf32> to vector<8xf32>
    %113 = vector.shape_cast %112 : vector<8xf32> to vector<8x1xf32>
    %cst_45 = arith.constant 3.200000e+01 : f32
    %114 = vector.broadcast %cst_45 : f32 to vector<8x1xf32>
    %115 = arith.divf %113, %114 : vector<8x1xf32>
    %cst_46 = arith.constant 9.99999996E-13 : f32
    %116 = vector.broadcast %cst_46 : f32 to vector<8x1xf32>
    %117 = arith.addf %115, %116 : vector<8x1xf32>
    %118 = math.rsqrt %117 : vector<8x1xf32>
    %119 = vector.broadcast %118 : vector<8x1xf32> to vector<8x32xf32>
    %120 = arith.mulf %110, %119 : vector<8x32xf32>
    %121 = vector.broadcast %103 : vector<1x32xf32> to vector<8x32xf32>
    %122 = arith.mulf %120, %121 : vector<8x32xf32>
    %123 = vector.broadcast %104 : vector<1x32xf32> to vector<8x32xf32>
    %124 = arith.addf %122, %123 : vector<8x32xf32>
    %125 = arith.truncf %124 : vector<8x32xf32> to vector<8x32xbf16>
    %c0_47 = arith.constant 0 : index
    %c0_48 = arith.constant 0 : index
    %c0_49 = arith.constant 0 : index
    %126 = vector.load %arg9[%c0_47, %c0_48, %c0_49] : memref<1x8x32xbf16, #tpu.memory_space<vmem>>, vector<1x8x32xbf16>
    %127 = vector.shape_cast %126 : vector<1x8x32xbf16> to vector<8x32xbf16>
    %128 = vector.shape_cast %125 : vector<8x32xbf16> to vector<1x8x32xbf16>
    tpu.vector_store %arg9[%c0_47, %c0_48, %c0_49], %128 {strides = array<i32>} : memref<1x8x32xbf16, #tpu.memory_space<vmem>>, vector<1x8x32xbf16>,
    return
  }
  func.func @transform_0(%arg0: i32) -> (i32, i32, i32) {
    %c0_i32 = arith.constant 0 : i32
    %c0_i32_0 = arith.constant 0 : i32
    %c0_i32_1 = arith.constant 0 : i32
    return %arg0, %c0_i32, %c0_i32_0 : i32, i32, i32
  }
  func.func @transform_1(%arg0: i32) -> (i32, i32, i32) {
    %c0_i32 = arith.constant 0 : i32
    %c0_i32_0 = arith.constant 0 : i32
    %c0_i32_1 = arith.constant 0 : i32
    return %arg0, %c0_i32, %c0_i32_0 : i32, i32, i32
  }
  func.func @transform_2(%arg0: i32) -> (i32, i32) {
    %c0_i32 = arith.constant 0 : i32
    %c0_i32_0 = arith.constant 0 : i32
    %c0_i32_1 = arith.constant 0 : i32
    return %c0_i32, %c0_i32_0 : i32, i32
  }
  func.func @transform_3(%arg0: i32) -> (i32, i32) {
    %c0_i32 = arith.constant 0 : i32
    %c0_i32_0 = arith.constant 0 : i32
    %c0_i32_1 = arith.constant 0 : i32
    return %c0_i32, %c0_i32_0 : i32, i32
  }
  func.func @transform_4(%arg0: i32) -> (i32, i32) {
    %c0_i32 = arith.constant 0 : i32
    %c0_i32_0 = arith.constant 0 : i32
    %c0_i32_1 = arith.constant 0 : i32
    return %c0_i32, %c0_i32_0 : i32, i32
  }
  func.func @transform_5(%arg0: i32) -> (i32, i32) {
    %c0_i32 = arith.constant 0 : i32
    %c0_i32_0 = arith.constant 0 : i32
    %c0_i32_1 = arith.constant 0 : i32
    return %c0_i32, %c0_i32_0 : i32, i32
  }
  func.func @transform_6(%arg0: i32) -> (i32, i32) {
    %c0_i32 = arith.constant 0 : i32
    %c0_i32_0 = arith.constant 0 : i32
    %c0_i32_1 = arith.constant 0 : i32
    return %c0_i32, %c0_i32_0 : i32, i32
  }
  func.func @transform_7(%arg0: i32) -> (i32, i32) {
    %c0_i32 = arith.constant 0 : i32
    %c0_i32_0 = arith.constant 0 : i32
    %c0_i32_1 = arith.constant 0 : i32
    return %c0_i32, %c0_i32_0 : i32, i32
  }
  func.func @transform_8(%arg0: i32) -> (i32, i32, i32) {
    %c0_i32 = arith.constant 0 : i32
    %c0_i32_0 = arith.constant 0 : i32
    %c0_i32_1 = arith.constant 0 : i32
    return %arg0, %c0_i32, %c0_i32_0 : i32, i32, i32
  }
}

module attributes {stable_mosaic.version = 11 : i64} {
  func.func @_ffn_block_kernel(%arg0: i32, %arg1: memref<16x32xbf16, #tpu.memory_space<vmem>>, %arg2: memref<32x64xbf16, #tpu.memory_space<vmem>>, %arg3: memref<1x64xf32, #tpu.memory_space<vmem>>, %arg4: memref<64x32xbf16, #tpu.memory_space<vmem>>, %arg5: memref<1x32xf32, #tpu.memory_space<vmem>>, %arg6: memref<1x32xf32, #tpu.memory_space<vmem>>, %arg7: memref<1x32xf32, #tpu.memory_space<vmem>>, %arg8: memref<16x32xbf16, #tpu.memory_space<vmem>>) attributes {dimension_semantics = [#tpu.dimension_semantics<parallel>], iteration_bounds = array<i64: 1>, scalar_prefetch = 0 : i64, scratch_operands = 0 : i64, tpu.core_type = #tpu.core_type<tc>, window_params = [{transform_indices = @transform_0, window_bounds = array<i64: 16, 32>}, {pipeline_mode = #tpu.pipeline_mode<synchronous>, transform_indices = @transform_1, window_bounds = array<i64: 32, 64>}, {pipeline_mode = #tpu.pipeline_mode<synchronous>, transform_indices = @transform_2, window_bounds = array<i64: 1, 64>}, {pipeline_mode = #tpu.pipeline_mode<synchronous>, transform_indices = @transform_3, window_bounds = array<i64: 64, 32>}, {pipeline_mode = #tpu.pipeline_mode<synchronous>, transform_indices = @transform_4, window_bounds = array<i64: 1, 32>}, {pipeline_mode = #tpu.pipeline_mode<synchronous>, transform_indices = @transform_5, window_bounds = array<i64: 1, 32>}, {pipeline_mode = #tpu.pipeline_mode<synchronous>, transform_indices = @transform_6, window_bounds = array<i64: 1, 32>}, {transform_indices = @transform_7, window_bounds = array<i64: 16, 32>}]} {
    %c0 = arith.constant 0 : index
    %c0_0 = arith.constant 0 : index
    %0 = vector.load %arg1[%c0, %c0_0] : memref<16x32xbf16, #tpu.memory_space<vmem>>, vector<16x32xbf16>
    %c0_1 = arith.constant 0 : index
    %c0_2 = arith.constant 0 : index
    %1 = vector.load %arg2[%c0_1, %c0_2] : memref<32x64xbf16, #tpu.memory_space<vmem>>, vector<32x64xbf16>
    %cst = arith.constant dense<0.000000e+00> : vector<16x64xf32>
    %2 = tpu.matmul %0, %1, %cst {dimension_numbers = #tpu.dot_dimension_numbers<[1], [0], [0], [1], [0, 0, 1, 1], [], []>} : vector<16x32xbf16>, vector<32x64xbf16>, vector<16x64xf32> -> vector<16x64xf32>
    %c0_3 = arith.constant 0 : index
    %c0_4 = arith.constant 0 : index
    %3 = vector.load %arg3[%c0_3, %c0_4] : memref<1x64xf32, #tpu.memory_space<vmem>>, vector<1x64xf32>
    %4 = vector.broadcast %3 : vector<1x64xf32> to vector<16x64xf32>
    %5 = arith.addf %2, %4 : vector<16x64xf32>
    %cst_5 = arith.constant 5.000000e-01 : f32
    %6 = vector.broadcast %cst_5 : f32 to vector<16x64xf32>
    %7 = arith.mulf %6, %5 : vector<16x64xf32>
    %cst_6 = arith.constant 4.471500e-02 : f32
    %8 = vector.broadcast %cst_6 : f32 to vector<16x64xf32>
    %9 = arith.mulf %8, %5 : vector<16x64xf32>
    %10 = arith.mulf %9, %5 : vector<16x64xf32>
    %11 = arith.mulf %10, %5 : vector<16x64xf32>
    %12 = arith.addf %5, %11 : vector<16x64xf32>
    %cst_7 = arith.constant 0.797884583 : f32
    %13 = vector.broadcast %cst_7 : f32 to vector<16x64xf32>
    %14 = arith.mulf %13, %12 : vector<16x64xf32>
    %15 = math.tanh %14 : vector<16x64xf32>
    %cst_8 = arith.constant 1.000000e+00 : f32
    %16 = vector.broadcast %cst_8 : f32 to vector<16x64xf32>
    %17 = arith.addf %16, %15 : vector<16x64xf32>
    %18 = arith.mulf %7, %17 : vector<16x64xf32>
    %19 = arith.truncf %18 : vector<16x64xf32> to vector<16x64xbf16>
    %c0_9 = arith.constant 0 : index
    %c0_10 = arith.constant 0 : index
    %20 = vector.load %arg4[%c0_9, %c0_10] : memref<64x32xbf16, #tpu.memory_space<vmem>>, vector<64x32xbf16>
    %cst_11 = arith.constant dense<0.000000e+00> : vector<16x32xf32>
    %21 = tpu.matmul %19, %20, %cst_11 {dimension_numbers = #tpu.dot_dimension_numbers<[1], [0], [0], [1], [0, 0, 1, 1], [], []>} : vector<16x64xbf16>, vector<64x32xbf16>, vector<16x32xf32> -> vector<16x32xf32>
    %c0_12 = arith.constant 0 : index
    %c0_13 = arith.constant 0 : index
    %22 = vector.load %arg5[%c0_12, %c0_13] : memref<1x32xf32, #tpu.memory_space<vmem>>, vector<1x32xf32>
    %23 = vector.broadcast %22 : vector<1x32xf32> to vector<16x32xf32>
    %24 = arith.addf %21, %23 : vector<16x32xf32>
    %25 = arith.extf %0 : vector<16x32xbf16> to vector<16x32xf32>
    %26 = arith.addf %24, %25 : vector<16x32xf32>
    %c0_14 = arith.constant 0 : index
    %c0_15 = arith.constant 0 : index
    %27 = vector.load %arg6[%c0_14, %c0_15] : memref<1x32xf32, #tpu.memory_space<vmem>>, vector<1x32xf32>
    %c0_16 = arith.constant 0 : index
    %c0_17 = arith.constant 0 : index
    %28 = vector.load %arg7[%c0_16, %c0_17] : memref<1x32xf32, #tpu.memory_space<vmem>>, vector<1x32xf32>
    %cst_18 = arith.constant dense<0.000000e+00> : vector<16xf32>
    %29 = vector.multi_reduction <add>, %26, %cst_18 [1] : vector<16x32xf32> to vector<16xf32>
    %30 = vector.shape_cast %29 : vector<16xf32> to vector<16x1xf32>
    %cst_19 = arith.constant 3.200000e+01 : f32
    %31 = vector.broadcast %cst_19 : f32 to vector<16x1xf32>
    %32 = arith.divf %30, %31 : vector<16x1xf32>
    %33 = vector.broadcast %32 : vector<16x1xf32> to vector<16x32xf32>
    %34 = arith.subf %26, %33 : vector<16x32xf32>
    %35 = arith.mulf %34, %34 : vector<16x32xf32>
    %cst_20 = arith.constant dense<0.000000e+00> : vector<16xf32>
    %36 = vector.multi_reduction <add>, %35, %cst_20 [1] : vector<16x32xf32> to vector<16xf32>
    %37 = vector.shape_cast %36 : vector<16xf32> to vector<16x1xf32>
    %cst_21 = arith.constant 3.200000e+01 : f32
    %38 = vector.broadcast %cst_21 : f32 to vector<16x1xf32>
    %39 = arith.divf %37, %38 : vector<16x1xf32>
    %cst_22 = arith.constant 9.99999996E-13 : f32
    %40 = vector.broadcast %cst_22 : f32 to vector<16x1xf32>
    %41 = arith.addf %39, %40 : vector<16x1xf32>
    %42 = math.rsqrt %41 : vector<16x1xf32>
    %43 = vector.broadcast %42 : vector<16x1xf32> to vector<16x32xf32>
    %44 = arith.mulf %34, %43 : vector<16x32xf32>
    %45 = vector.broadcast %27 : vector<1x32xf32> to vector<16x32xf32>
    %46 = arith.mulf %44, %45 : vector<16x32xf32>
    %47 = vector.broadcast %28 : vector<1x32xf32> to vector<16x32xf32>
    %48 = arith.addf %46, %47 : vector<16x32xf32>
    %49 = arith.truncf %48 : vector<16x32xf32> to vector<16x32xbf16>
    %c0_23 = arith.constant 0 : index
    %c0_24 = arith.constant 0 : index
    %50 = vector.load %arg8[%c0_23, %c0_24] : memref<16x32xbf16, #tpu.memory_space<vmem>>, vector<16x32xbf16>
    tpu.vector_store %arg8[%c0_23, %c0_24], %49 {strides = array<i32>} : memref<16x32xbf16, #tpu.memory_space<vmem>>, vector<16x32xbf16>,
    return
  }
  func.func @transform_0(%arg0: i32) -> (i32, i32) {
    %c0_i32 = arith.constant 0 : i32
    %c0_i32_0 = arith.constant 0 : i32
    return %arg0, %c0_i32 : i32, i32
  }
  func.func @transform_1(%arg0: i32) -> (i32, i32) {
    %c0_i32 = arith.constant 0 : i32
    %c0_i32_0 = arith.constant 0 : i32
    %c0_i32_1 = arith.constant 0 : i32
    return %c0_i32, %c0_i32_0 : i32, i32
  }
  func.func @transform_2(%arg0: i32) -> (i32, i32) {
    %c0_i32 = arith.constant 0 : i32
    %c0_i32_0 = arith.constant 0 : i32
    %c0_i32_1 = arith.constant 0 : i32
    return %c0_i32, %c0_i32_0 : i32, i32
  }
  func.func @transform_3(%arg0: i32) -> (i32, i32) {
    %c0_i32 = arith.constant 0 : i32
    %c0_i32_0 = arith.constant 0 : i32
    %c0_i32_1 = arith.constant 0 : i32
    return %c0_i32, %c0_i32_0 : i32, i32
  }
  func.func @transform_4(%arg0: i32) -> (i32, i32) {
    %c0_i32 = arith.constant 0 : i32
    %c0_i32_0 = arith.constant 0 : i32
    %c0_i32_1 = arith.constant 0 : i32
    return %c0_i32, %c0_i32_0 : i32, i32
  }
  func.func @transform_5(%arg0: i32) -> (i32, i32) {
    %c0_i32 = arith.constant 0 : i32
    %c0_i32_0 = arith.constant 0 : i32
    %c0_i32_1 = arith.constant 0 : i32
    return %c0_i32, %c0_i32_0 : i32, i32
  }
  func.func @transform_6(%arg0: i32) -> (i32, i32) {
    %c0_i32 = arith.constant 0 : i32
    %c0_i32_0 = arith.constant 0 : i32
    %c0_i32_1 = arith.constant 0 : i32
    return %c0_i32, %c0_i32_0 : i32, i32
  }
  func.func @transform_7(%arg0: i32) -> (i32, i32) {
    %c0_i32 = arith.constant 0 : i32
    %c0_i32_0 = arith.constant 0 : i32
    return %arg0, %c0_i32 : i32, i32
  }
}

</mosaic_0001>

<bundles_post_ra>
// kernel: tpu_custom_call.1
= control target key start
LH: loop header
LB: loop body
LE: loop exit
PB: predicated region body
PF: predicated region fallthrough
CT: control target
= control target key end

     0   :  { %7 = vsyncpa [#allocation3], 0  ;;  %s690_s0 = inlined_call_operand.hbm [shape: f32[16,128], index: 0, kind: input, shape index: {}]   ;;  %s691_s1 = inlined_call_operand.hbm [shape: f32[8,128], index: 1, kind: input, shape index: {}]   ;;  %s692_s2 = inlined_call_operand.hbm [shape: f32[16,128], index: 2, kind: output, shape index: {}]  }
   0x1   :  { %9 = vsyncpa [#allocation3 + $0x1], 0 }
   0x2   :  { %10 = vsyncpa [#allocation6], 0 }
   0x3   :  { %11 = vsyncpa [#allocation4], 0 }
   0x4   :  { %13 = vsyncpa [#allocation4 + $0x1], 0  ;;  %s489_s9 = smov 0   ;;  %s491_s10 = smov 0  }
   0x5   :  { %s493_s11 = smov 0   ;;  %s495_s12 = smov 0  }
   0x6 LB: > { %s510_s13 = sadd.s32 4294967295, %s469_s12   ;;  %s270_s14 = sadd.s32 4294967294, %s469_s12   ;;  %s469_s12 = sphi %s495_s12, %s716_s12   ;;  %s465_s11 = sphi %s493_s11, %s715_s11   ;;  %s461_s10 = sphi %s491_s10, %s714_s10   ;;  %s457_s9 = sphi %s489_s9, %s713_s9  }
   0x7   : > { %p39_p0 = scmp.ne.s32.totalorder %s461_s10, %s457_s9  ;;  %p693_p1 = scmp.eq.s32.totalorder %s510_s13, 0 }
   0x8   : > { %p90_p3 = scmp.eq.s32.totalorder %s270_s14, 1  ;;  %p271_p5 = scmp.ge.s32.totalorder %s469_s12, 1 }
   0x9   : > { %p519_p4 = por %p693_p1, %p39_p0  ;;  %p97_p7 = scmp.lt.s32.totalorder %s469_s12, 3 }
   0xa   : > { %p524_p6 = por %p90_p3, %p39_p0  ;;  %s471_s18 = smov [#allocation5]  }
   0xb   : > { %s696_s15 = scalar_select %p519_p4, 1, 0 }
   0xc   : > { %s697_s16 = scalar_select %p524_p6, 1, 0 }
   0xd   : > { %p529_p8 = pnand %p271_p5, %p97_p7  ;;  %s110_s19 = sshll.u32 %s471_s18, 4  ;;  %s111_s19 = int_to_ptr.vmem [resolvable:$true] %s110_s19 }
   0xe   : > { %s537_s20 = sadd.s32 1, %s469_s12   ;;  %s26_s24 = sadd.s32 1, %s465_s11 }
   0xf   : > { %s698_s17 = scalar_select %p529_p8, 1, 0 }
  0x10   : > { %p292_p10 = pneg %p529_p8  ;;  %s23_s22 = ssub.s32 %s469_s12, %s537_s20 }
  0x11   : > { %p547_p12 = scmp.eq.s32.totalorder %s23_s22, 0  ;;  %s341_s27 = scalar_lea.hbm %s691_s1, 128 }
  0x12   : > { %p541_p11 = pnand %p292_p10, %p693_p1  ;;  %p342_p0 = scmp.ne.s32.totalorder %s691_s1, %s341_s27 }
  0x13   : > { %s700_s23 = scalar_select %p547_p12, 1, 0 }
  0x14   : > { %p343_p3 = pneg %p541_p11  ;;  %p348_p10 = scmp.lt.u32.totalorder %s341_s27, %s691_s1 }
  0x16   : > { %p344_p5 = pnand %p343_p3, %p342_p0 }
  0x18   : > { %p345_p7 = pneg %p344_p5 }
  0x1a   : > { %p350_p9 = pnand %p348_p10, %p345_p7 }
  0x1c   : > { %353 = shalt.err (!%p350_p9)
}
  0x1d   : > { %s354_s4 = scalar_lea.vmem %s111_s19, 128  ;;  %p362_p6 = scmp.lt.s32.totalorder %s111_s19, %s111_s19 }
  0x1e   : > { %p355_p1 = scmp.ne.s32.totalorder %s111_s19, %s354_s4  ;;  %p363_p4 = scmp.lt.s32.totalorder %s354_s4, %s354_s4 }
  0x20   : > { %p357_p2 = pnand %p355_p1, %p343_p3  ;;  %p364_p8 = por %p363_p4, %p362_p6 }
  0x22   : > { %p358_p13 = pneg %p357_p2 }
  0x24   : > { %p365_p12 = pnand %p364_p8, %p358_p13 }
  0x26   : > { %368 = shalt.err (!%p365_p12)
}
  0x27   : > { %295 = dma.hbm_to_vmem [thread:$0]  (!%p541_p11), %s691_s1, 128, %s111_s19, [#allocation6]  }
  0x28   : > { %p701_p1 = scmp.ne.s32.totalorder %s700_s23, 0  ;;  %p34_p2 = scmp.eq.s32.totalorder %s469_s12, 0 }
  0x29   : > { %p702_p4 = scmp.ne.s32.totalorder %s465_s11, %s461_s10  ;;  %p703_p6 = scmp.eq.s32.totalorder %s510_s13, 1 }
  0x2a   : > { %s573_s7 = scalar_select %p701_p1, %s465_s11, %s26_s24  }
  0x2b   : > { %p581_p8 = por %p703_p6, %p702_p4  ;;  %p305_p9 = scmp.lt.s32.totalorder %s469_s12, 2 }
  0x2c   : > { %s121_s14 = sand.u32 1, %s465_s11   ;;  %p705_p12 = pmov %p702_p4 }
  0x2d   : > { %s274_s18 = sshll.u32 %s121_s14, 3  ;;  %s275_s21 = sshll.u32 %s469_s12, 7 }
  0x2e   : > { %p35_p13 = por %p34_p2, %p705_p12  ;;  %s594_s19 = scalar_lea.hbm %s690_s0, %s275_s21 }
  0x2f   : > { %s125_s23 = scalar_lea.vmem [#allocation2], %s274_s18  ;;  %s122_s27 = scalar_lea.sflag [#allocation3], %s121_s14 }
  0x30   : > { %s132_s24 = sshll.u32 %s125_s23, 4  ;;  %p596_p11 = pnand %p305_p9, %p35_p13  ;;  %s600_s24 = int_to_ptr.vmem [resolvable:$true] %s132_s24 }
  0x31   : > { %s369_s28 = scalar_lea.hbm %s594_s19, 128  ;;  %s374_s3 = scalar_lea.hbm %s690_s0, 256 }
  0x32   : > { %p370_p0 = scmp.ne.s32.totalorder %s594_s19, %s369_s28  ;;  %p371_p3 = pneg %p596_p11 }
  0x33   : > { %p375_p10 = scmp.lt.u32.totalorder %s594_s19, %s690_s0  ;;  %p376_p1 = scmp.lt.u32.totalorder %s374_s3, %s369_s28 }
  0x34   : > { %p372_p5 = pnand %p371_p3, %p370_p0  ;;  %p378_p4 = scmp.lt.u32.totalorder %s369_s28, %s594_s19 }
  0x35   : > { %p377_p2 = por %p376_p1, %p375_p10 }
  0x36   : > { %p373_p7 = pneg %p372_p5 }
  0x37   : > { %p379_p6 = por %p378_p4, %p377_p2 }
  0x39   : > { %p380_p9 = pnand %p379_p6, %p373_p7 }
  0x3b   : > { %383 = shalt.err (!%p380_p9)
}
  0x3c   : > { %s384_s6 = scalar_lea.vmem %s600_s24, 128  ;;  %s472_s14 = smov [#allocation2]  }
  0x3d   : > { %p385_p12 = scmp.ne.s32.totalorder %s600_s24, %s384_s6  ;;  %s389_s18 = sshll.u32 %s472_s14, 4  ;;  %s390_s18 = int_to_ptr.vmem [resolvable:$false] %s389_s18 }
  0x3e   : > { %s391_s21 = scalar_lea.vmem %s390_s18, 256  ;;  %p392_p5 = scmp.lt.s32.totalorder %s600_s24, %s390_s18 }
  0x3f   : > { %p387_p13 = pnand %p385_p12, %p371_p3  ;;  %p393_p10 = scmp.lt.s32.totalorder %s391_s21, %s384_s6 }
  0x41   : > { %p388_p0 = pneg %p387_p13  ;;  %p394_p1 = por %p393_p10, %p392_p5 }
  0x43   : > { %p395_p2 = pnand %p394_p1, %p388_p0 }
  0x45   : > { %398 = shalt.err (!%p395_p2)
}
  0x46   : > { %299 = dma.hbm_to_vmem [thread:$0]  (!%p596_p11), %s594_s19, 128, %s600_s24, %s122_s27  }
  0x47   : > { %p707_p7 = scmp.ne.s32.totalorder %s698_s17, 0 }
  0x48   : > { %s630_s22 = sand.u32 (!%p707_p7), 1, %s461_s10   ;;  %p708_p3 = scmp.ne.s32.totalorder (!%p707_p7), %s696_s15, 0 }
  0x49   : > { %141 = sbr.rel (%p707_p7) target bundleno = 109 (0x6d), region = 28  ;;  %s277_s25 = sshll.u32 (!%p707_p7), %s630_s22, 3 }
  0x4a   : > { %s144_s23 = scalar_lea.sflag (!%p707_p7), [#allocation3], %s630_s22  ;;  %s147_s28 = scalar_lea.vmem (!%p707_p7), [#allocation2], %s277_s25 }
  0x50   : > { %444 = dma.done.wait (%p708_p3), %s144_s23, 128  }
  0x51   : > { %446 = vsyncadd (%p708_p3), %s144_s23, 4294967168  ;;  %p709_p4 = scmp.eq.s32.totalorder %s510_s13, 0 }
  0x53   : > { %448 = dma.done.wait (%p709_p4), [#allocation6], 128   ;;  %p710_p11 = pmov %p709_p4 }
  0x54   : > { %s171_s17 = scalar_lea.vmem [#allocation7], %s277_s25  ;;  %s281_s24 = sshll.u32 %s510_s13, 7  ;;  %v172_v0 = vld [vmem:[%s147_s28] sm:$0xff]  ;;  %v173_v1 = vld [vmem:[#allocation5] sm:$0xff] }
  0x55   : > { %450 = vsyncadd (%p710_p11), [#allocation6], 4294967168  ;;  %s190_s19 = sshll.u32 %s171_s17, 4  ;;  %v174_v2 = vadd.f32 %v173_v1, %v172_v0  ;;  %s648_s27 = scalar_lea.hbm %s692_s2, %s281_s24  ;;  %s643_s19 = int_to_ptr.vmem [resolvable:$true] %s190_s19 }
  0x56   : > { %s177_s29 = scalar_lea.sflag [#allocation4], %s630_s22  ;;  %s399_s30 = scalar_lea.vmem %s643_s19, 128 }
  0x57   : > { %175 = vst [vmem:[%s171_s17] sm:$0xff] %v174_v2  ;;  %p400_p6 = scmp.ne.s32.totalorder %s643_s19, %s399_s30  ;;  %s473_s13 = smov [#allocation7]  }
  0x58   : > { %s403_s3 = sshll.u32 %s473_s13, 4  ;;  %s404_s3 = int_to_ptr.vmem [resolvable:$false] %s403_s3 }
  0x59   : > { %p401_p9 = pnand %p400_p6, %p581_p8  ;;  %s405_s4 = scalar_lea.vmem %s404_s3, 256 }
  0x5a   : > { %p406_p13 = scmp.lt.s32.totalorder %s643_s19, %s404_s3  ;;  %p407_p0 = scmp.lt.s32.totalorder %s405_s4, %s399_s30 }
  0x5b   : > { %p402_p12 = pneg %p401_p9 }
  0x5c   : > { %p408_p5 = por %p407_p0, %p406_p13 }
  0x5e   : > { %p409_p10 = pnand %p408_p5, %p402_p12 }
  0x60   : > { %412 = shalt.err (!%p409_p10)
}
  0x61   : > { %s413_s5 = scalar_lea.hbm %s648_s27, 128  ;;  %s417_s18 = scalar_lea.hbm %s692_s2, 256 }
  0x62   : > { %p414_p1 = scmp.ne.s32.totalorder %s648_s27, %s413_s5  ;;  %p418_p3 = scmp.lt.u32.totalorder %s648_s27, %s692_s2 }
  0x63   : > { %p419_p4 = scmp.lt.u32.totalorder %s417_s18, %s413_s5  ;;  %p421_p6 = scmp.lt.u32.totalorder %s413_s5, %s648_s27 }
  0x64   : > { %p415_p2 = pnand %p414_p1, %p581_p8 }
  0x65   : > { %p420_p11 = por %p419_p4, %p418_p3 }
  0x66   : > { %p416_p7 = pneg %p415_p2 }
  0x67   : > { %p422_p9 = por %p421_p6, %p420_p11 }
  0x69   : > { %p423_p12 = pnand %p422_p9, %p416_p7 }
  0x6b   : > { %426 = shalt.err (!%p423_p12)
}
  0x6c   : > { %290 = dma.vmem_to_hbm [thread:$0]  (%p581_p8), %s643_s19, 128, %s648_s27, %s177_s29  }
  0x6d PF: > { %s202_s25 = sand.u32 1, %s457_s9   ;;  %p711_p13 = scmp.ne.s32.totalorder %s697_s16, 0 }
  0x6e   : > { %p712_p0 = scmp.ge.s32.totalorder %s469_s12, 2  ;;  %s203_s23 = scalar_lea.sflag [#allocation4], %s202_s25 }
  0x70   : > { %p301_p5 = pnand %p712_p0, %p711_p13 }
  0x72   : > { %452 = dma.done.wait (!%p301_p5), %s203_s23, 128  }
  0x73   : > { %454 = vsyncadd (!%p301_p5), %s203_s23, 4294967168  ;;  %p16_p10 = scmp.ge.s32.totalorder %s537_s20, 4   ;;  %s713_s9 = smov %s461_s10 }
  0x74   : > { %s714_s10 = smov %s465_s11  ;;  %s715_s11 = smov %s573_s7 }
  0x75   : > { %s716_s12 = smov %s537_s20  ;;  %18 = sbr.rel (!%p16_p10) target bundleno = 6 (0x6), region = 77 }
  0x7c   :  { %208 = vsyncpa [#allocation3], 1 }
  0x7d   :  { %210 = vsyncpa [#allocation3 + $0x1], 1 }
  0x7e   :  { %211 = vsyncpa [#allocation6], 1 }
  0x7f   :  { %212 = vsyncpa [#allocation4], 1 }
  0x80   :  { %214 = vsyncpa [#allocation4 + $0x1], 1 }

// kernel: _lambda_.9
= control target key start
LH: loop header
LB: loop body
LE: loop exit
PB: predicated region body
PF: predicated region fallthrough
CT: control target
= control target key end

     0   :  { %vm18_vm0 = vcmask 261120   ;;  %vm70_vm1 = vcmask 257024   ;;  %s129_s0 = inlined_call_operand.vmem [shape: f32[16,32], index: 0, kind: input, shape index: {}]   ;;  %s130_s1 = inlined_call_operand.vmem [shape: f32[1,32], index: 1, kind: input, shape index: {}]   ;;  %s131_s2 = inlined_call_operand.vmem [shape: f32[1,32], index: 2, kind: input, shape index: {}]   ;;  %s132_s3 = inlined_call_operand.vmem [shape: bf16[16,32], index: 3, kind: output, shape index: {}]  }
   0x1   :  { %v14_v0 = vld [vmem:[%s129_s0] sm:$0xff]  ;;  %v15_v1 = vld [vmem:[%s129_s0 + $0x8] sm:$0xff] }
   0x2   :  { %v19_v2 = vsel %vm18_vm0, %v14_v0, 0.0  ;;  %v22_v3 = vsel %vm18_vm0, %v15_v1, 0.0  ;;  %v77_v21 = vld [vmem:[%s130_s1] ss:$0 sm:$0xff] }
   0x3   :  { %20 = vadd.xlane.f32.xlu0 %v19_v2  ;;  %v78_v23 = vld [vmem:[%s131_s2] ss:$0 sm:$0xff] }
   0x7   :  { %23 = vadd.xlane.f32.xlu0 %v22_v3 }
  0x90   :  { %v21_v4 = vpop.xlane.xlu0 %20 }
  0x91   :  { %v26_v5 = vmul.f32 0.03125, %v21_v4 }
  0x93   :  { %v28_v6 = vsub.f32 %v14_v0, %v26_v5 }
  0x94   :  { %v24_v7 = vpop.xlane.xlu0 %23 }
  0x95   :  { %v27_v8 = vmul.f32 0.03125, %v24_v7  ;;  %v30_v9 = vmul.f32 %v28_v6, %v28_v6 }
  0x97   :  { %v29_v10 = vsub.f32 %v15_v1, %v27_v8  ;;  %v32_v11 = vsel %vm18_vm0, %v30_v9, 0.0 }
  0x98   :  { %33 = vadd.xlane.f32.xlu1 %v32_v11 }
  0x99   :  { %v31_v12 = vmul.f32 %v29_v10, %v29_v10 }
  0x9b   :  { %v35_v13 = vsel %vm18_vm0, %v31_v12, 0.0 }
  0x9c   :  { %36 = vadd.xlane.f32.xlu1 %v35_v13 }
 0x125   :  { %v34_v14 = vpop.xlane.xlu1 %33 }
 0x126   :  { %v38_v15 = vmul.f32 0.03125, %v34_v14 }
 0x128   :  { %v40_v16 = vadd.f32 1e-12, %v38_v15 }
 0x129   :  { %v37_v17 = vpop.xlane.xlu1 %36 }
 0x12a   :  { %83 = vrsqrt.f32 %v40_v16  ;;  %v39_v18 = vmul.f32 0.03125, %v37_v17 }
 0x12c   :  { %v41_v19 = vadd.f32 1e-12, %v39_v18 }
 0x12e   :  { %85 = vrsqrt.f32 %v41_v19 }
 0x134   :  { %v84_v20 = vpop.eup %83 }
 0x135   :  { %v44_v22 = vmul.f32 %v84_v20, %v28_v6 }
 0x137   :  { %v52_v24 = vmul.f32 %v77_v21, %v44_v22 }
 0x138   :  { %v86_v25 = vpop.eup %85 }
 0x139   :  { %v60_v26 = vadd.f32 %v78_v23, %v52_v24  ;;  %v45_v27 = vmul.f32 %v86_v25, %v29_v10 }
 0x13b   :  { %v81_v28 = vpack.c.bf16 %v60_v26, %v60_v26  ;;  %v53_v29 = vmul.f32 %v77_v21, %v45_v27 }
 0x13d   :  { %71 = vst.msk [vmem:[%s132_s3] sm:$0xf] %vm70_vm1, %v81_v28  ;;  %v61_v30 = vadd.f32 %v78_v23, %v53_v29 }
 0x13f   :  { %v82_v31 = vpack.c.bf16 %v61_v30, %v61_v30 }
 0x141   :  { %72 = vst.msk [vmem:[%s132_s3 + $0x4] sm:$0xf] %vm70_vm1, %v82_v31 }

// kernel: _lambda_.11
= control target key start
LH: loop header
LB: loop body
LE: loop exit
PB: predicated region body
PF: predicated region fallthrough
CT: control target
= control target key end

     0   :  { %v332_v0 = vmov 0.0   ;;  %vm333_vm0 = vmmov 0   ;;  %vm57_vm1 = vcmask 261120   ;;  %vm160_vm2 = vcmask 523264   ;;  %s418_s1 = inlined_call_operand.vmem [shape: bf16[32,64], index: 1, kind: input, shape index: {}]   ;;  %s419_s0 = inlined_call_operand.vmem [shape: bf16[16,32], index: 0, kind: input, shape index: {}]   ;;  %s420_s3 = inlined_call_operand.vmem [shape: bf16[64,32], index: 3, kind: input, shape index: {}]   ;;  %s421_s2 = inlined_call_operand.vmem [shape: f32[1,64], index: 2, kind: input, shape index: {}]   ;;  %s422_s4 = inlined_call_operand.vmem [shape: f32[1,32], index: 4, kind: input, shape index: {}]   ;;  %s423_s5 = inlined_call_operand.vmem [shape: f32[1,32], index: 5, kind: input, shape index: {}]   ;;  %s424_s6 = inlined_call_operand.vmem [shape: f32[1,32], index: 6, kind: input, shape index: {}]   ;;  %s425_s7 = inlined_call_operand.vmem [shape: bf16[16,32], index: 7, kind: output, shape index: {}]  }
   0x1   :  { %294 = vmatprep.subr.bf16.mxu0 %v332_v0  ;;  %v316_v1 = vld [vmem:[%s418_s1] sm:$0xff]   ;;  %298 = vmatprep.mubr.msk.bf16.mxu0 %vm333_vm0, %v332_v0  ;;  %v317_v2 = vld [vmem:[%s418_s1 + $0x8] sm:$0xff]   ;;  %v321_v6 = vld [vmem:[%s420_s3 + $0x10] sm:$0xff]   ;;  %vm262_vm3 = vcmask 257024  }
   0x2   :  { %302 = vmatprep.subr.bf16.mxu1 %v332_v0  ;;  %310 = vmatprep.mubr.msk.bf16.mxu1 %vm333_vm0, %v332_v0  ;;  %v27_v3 = vld [vmem:[%s419_s0] sm:$0xff]   ;;  %v320_v5 = vld [vmem:[%s420_s3 + $0x8] sm:$0xff]   ;;  %v322_v7 = vld [vmem:[%s420_s3 + $0x18] sm:$0xff]  }
   0x3   :  { %295 = vmatpush3.bf16.msra.mxu0 %v316_v1  ;;  %v319_v4 = vld [vmem:[%s420_s3] sm:$0xff]   ;;  %v205_v35 = vunpack.c.l.bf16 %v27_v3  ;;  %v206_v39 = vunpack.c.h.bf16 %v27_v3 }
   0x4   :  { %296 = vmatprep.subr.bf16.mxu0 %v332_v0  ;;  %303 = vmatpush3.bf16.msra.mxu1 %v319_v4  ;;  %v269_v8 = vld [vmem:[%s421_s2] ss:$0 sm:$0xff] }
   0x5   :  { %304 = vmatprep.subr.bf16.mxu1 %v332_v0  ;;  %v274_v34 = vld [vmem:[%s422_s4] ss:$0 sm:$0xff] }
   0x7   :  { %297 = vmatpush3.bf16.msra.mxu0 %v317_v2  ;;  %v281_v2 = vld [vmem:[%s424_s6] ss:$0 sm:$0xff] }
   0x8   :  { %305 = vmatpush3.bf16.msra.mxu1 %v320_v5 }
   0x9   :  { %306 = vmatprep.subr.bf16.mxu1 %v332_v0 }
   0xa   :  { %299 = vmatmul.mubr.msk.bf16.vlgmr.msra.gmra.mrb[0].mxu0 %vm57_vm1, %v27_v3 }
   0xc   :  { %307 = vmatpush3.bf16.msra.mxu1 %v321_v6 }
   0xd   :  { %308 = vmatprep.subr.bf16.mxu1 %v332_v0  ;;  %v280_v0 = vld [vmem:[%s423_s5] ss:$0 sm:$0xff] }
  0x10   :  { %309 = vmatpush3.bf16.msra.mxu1 %v322_v7 }
  0xdd   :  { %v95_v9 = vpop.f32.mrb[0].mxu0 }
  0xde   :  { %v96_v10 = vadd.f32 %v269_v8, %v95_v9  ;;  %v300_v11 = vpop.f32.mrb[1].mxu0 }
  0xdf   :  { %v98_v12 = vpop.f32.mrb[2].mxu0 }
  0xe0   :  { %v104_v13 = vmul.f32 0.044715, %v96_v10  ;;  %v99_v14 = vadd.f32 %v269_v8, %v98_v12  ;;  %v301_v15 = vpop.f32.mrb[3].mxu0  ;;  %v102_v28 = vmul.f32 0.5, %v96_v10 }
  0xe2   :  { %v106_v16 = vmul.f32 %v104_v13, %v96_v10  ;;  %v105_v17 = vmul.f32 0.044715, %v99_v14  ;;  %v103_v29 = vmul.f32 0.5, %v99_v14 }
  0xe4   :  { %v108_v18 = vmul.f32 %v106_v16, %v96_v10  ;;  %v107_v19 = vmul.f32 %v105_v17, %v99_v14 }
  0xe6   :  { %v110_v20 = vadd.f32 %v108_v18, %v96_v10  ;;  %v109_v21 = vmul.f32 %v107_v19, %v99_v14 }
  0xe8   :  { %v112_v22 = vmul.f32 0.7978846, %v110_v20  ;;  %v111_v23 = vadd.f32 %v109_v21, %v99_v14 }
  0xea   :  { %324 = vtanh.f32 %v112_v22  ;;  %v113_v24 = vmul.f32 0.7978846, %v111_v23 }
  0xec   :  { %326 = vtanh.f32 %v113_v24 }
  0xf4   :  { %v325_v25 = vpop.eup %324 }
  0xf5   :  { %v116_v26 = vadd.f32 1.0, %v325_v25 }
  0xf6   :  { %v327_v27 = vpop.eup %326 }
  0xf7   :  { %v117_v30 = vadd.f32 1.0, %v327_v27  ;;  %v118_v31 = vmul.f32 %v116_v26, %v102_v28 }
  0xf9   :  { %v119_v32 = vmul.f32 %v117_v30, %v103_v29 }
  0xfb   :  { %v120_v33 = vpack.c.bf16 %v119_v32, %v118_v31 }
  0xfd   :  { %311 = vmatmul.mubr.msk.bf16.vlgmr.msra.gmra.mrb[0].mxu1 %vm160_vm2, %v120_v33 }
 0x1d0   :  { %v198_v36 = vpop.f32.mrb[0].mxu1 }
 0x1d1   :  { %v199_v37 = vadd.f32 %v274_v34, %v198_v36  ;;  %v312_v38 = vpop.f32.mrb[1].mxu1 }
 0x1d2   :  { %v201_v40 = vpop.f32.mrb[2].mxu1 }
 0x1d3   :  { %v202_v41 = vadd.f32 %v274_v34, %v201_v40  ;;  %v313_v42 = vpop.f32.mrb[3].mxu1  ;;  %v207_v43 = vadd.f32 %v205_v35, %v199_v37 }
 0x1d5   :  { %v211_v44 = vsel %vm57_vm1, %v207_v43, 0.0  ;;  %v208_v45 = vadd.f32 %v206_v39, %v202_v41 }
 0x1d6   :  { %212 = vadd.xlane.f32.xlu0 %v211_v44 }
 0x1d7   :  { %v214_v46 = vsel %vm57_vm1, %v208_v45, 0.0 }
 0x1da   :  { %215 = vadd.xlane.f32.xlu0 %v214_v46 }
 0x263   :  { %v213_v47 = vpop.xlane.xlu0 %212 }
 0x264   :  { %v218_v48 = vmul.f32 0.03125, %v213_v47 }
 0x266   :  { %v220_v49 = vsub.f32 %v207_v43, %v218_v48 }
 0x267   :  { %v216_v50 = vpop.xlane.xlu0 %215 }
 0x268   :  { %v219_v51 = vmul.f32 0.03125, %v216_v50  ;;  %v222_v52 = vmul.f32 %v220_v49, %v220_v49 }
 0x26a   :  { %v221_v53 = vsub.f32 %v208_v45, %v219_v51  ;;  %v224_v54 = vsel %vm57_vm1, %v222_v52, 0.0 }
 0x26b   :  { %225 = vadd.xlane.f32.xlu1 %v224_v54 }
 0x26c   :  { %v223_v55 = vmul.f32 %v221_v53, %v221_v53 }
 0x26e   :  { %v227_v56 = vsel %vm57_vm1, %v223_v55, 0.0 }
 0x26f   :  { %228 = vadd.xlane.f32.xlu1 %v227_v56 }
 0x2f8   :  { %v226_v57 = vpop.xlane.xlu1 %225 }
 0x2f9   :  { %v230_v58 = vmul.f32 0.03125, %v226_v57 }
 0x2fb   :  { %v232_v59 = vadd.f32 1e-12, %v230_v58 }
 0x2fc   :  { %v229_v60 = vpop.xlane.xlu1 %228 }
 0x2fd   :  { %328 = vrsqrt.f32 %v232_v59  ;;  %v231_v61 = vmul.f32 0.03125, %v229_v60 }
 0x2ff   :  { %v233_v62 = vadd.f32 1e-12, %v231_v61 }
 0x301   :  { %330 = vrsqrt.f32 %v233_v62 }
 0x307   :  { %v329_v63 = vpop.eup %328 }
 0x308   :  { %v236_v1 = vmul.f32 %v329_v63, %v220_v49 }
 0x30a   :  { %v244_v3 = vmul.f32 %v280_v0, %v236_v1 }
 0x30b   :  { %v331_v4 = vpop.eup %330 }
 0x30c   :  { %v252_v5 = vadd.f32 %v281_v2, %v244_v3  ;;  %v237_v6 = vmul.f32 %v331_v4, %v221_v53 }
 0x30e   :  { %v284_v7 = vpack.c.bf16 %v252_v5, %v252_v5  ;;  %v245_v8 = vmul.f32 %v280_v0, %v237_v6 }
 0x310   :  { %263 = vst.msk [vmem:[%s425_s7] sm:$0xf] %vm262_vm3, %v284_v7  ;;  %v253_v9 = vadd.f32 %v281_v2, %v245_v8 }
 0x312   :  { %v285_v10 = vpack.c.bf16 %v253_v9, %v253_v9 }
 0x314   :  { %264 = vst.msk [vmem:[%s425_s7 + $0x4] sm:$0xf] %vm262_vm3, %v285_v10 }

// kernel: _lambda_.10
= control target key start
LH: loop header
LB: loop body
LE: loop exit
PB: predicated region body
PF: predicated region fallthrough
CT: control target
= control target key end

     0   :  { %s1265_s27 = smov 0   ;;  %s1391_s0 = inlined_call_operand.vmem [shape: bf16[2,8,32], index: 0, kind: input, shape index: {}]   ;;  %s1392_s1 = inlined_call_operand.vmem [shape: f32[2,1,8], index: 1, kind: input, shape index: {}]   ;;  %s1393_s2 = inlined_call_operand.vmem [shape: bf16[32,96], index: 2, kind: input, shape index: {}]   ;;  %s1394_s3 = inlined_call_operand.vmem [shape: f32[1,96], index: 3, kind: input, shape index: {}]   ;;  %s1395_s4 = inlined_call_operand.vmem [shape: bf16[32,32], index: 4, kind: input, shape index: {}]   ;;  %s1396_s5 = inlined_call_operand.vmem [shape: f32[1,32], index: 5, kind: input, shape index: {}]   ;;  %s1397_s6 = inlined_call_operand.vmem [shape: f32[1,32], index: 6, kind: input, shape index: {}]   ;;  %s1398_s7 = inlined_call_operand.vmem [shape: f32[1,32], index: 7, kind: input, shape index: {}]   ;;  %s1399_s8 = inlined_call_operand.vmem [shape: bf16[2,8,32], index: 8, kind: output, shape index: {}]  }
   0x1 LB: > { %s1030_s28 = sadd.s32 4294967295, %s1202_s27   ;;  %p1034_p0 = scmp.ge.s32.totalorder %s1202_s27, 1  ;;  %s1202_s27 = sphi %s1265_s27, %s18_s27  }
   0x2   : > { %p269_p1 = scmp.lt.s32.totalorder %s1202_s27, 3 }
   0x4   : > { %p270_p2 = pnand %p1034_p0, %p269_p1 }
   0x5   : > { %v1174_v0 = vld [vmem:[%s1393_s2] sm:$0xff] (!%p270_p2)   ;;  %v1204_v1 = vmov (!%p270_p2), 0.0   ;;  %v1175_v2 = vld [vmem:[%s1393_s2 + $0x8] sm:$0xff] (!%p270_p2)   ;;  %vm1205_vm0 = vmmov (!%p270_p2), 0   ;;  %p304_p3 = scmp.lt.s32.totalorder (!%p270_p2), %s1030_s28, 1  ;;  %vm340_vm1 = vcmask (!%p270_p2), 261120  }
   0x6   : > { %273 = sbr.rel (%p270_p2) target bundleno = 1817 (0x719), region = 52  ;;  %1086 = vmatprep.subr.bf16.mxu0 (!%p270_p2), %v1204_v1  ;;  %1094 = vmatprep.subr.bf16.mxu1 (!%p270_p2), %v1204_v1  ;;  %v1037_v4 = vld [vmem:[%s1394_s3] ss:$0 sm:$0xff] (!%p270_p2)  ;;  %s1206_s17 = smov (!%p270_p2), 96   ;;  %vm397_vm2 = vcmask (!%p270_p2), 64512   ;;  %vm461_vm3 = vcmask (!%p270_p2), 1043456  }
   0x7   : > { %1087 = vmatpush3.bf16.msra.mxu0 (!%p270_p2), %v1174_v0  ;;  %1090 = vmatprep.mubr.msk.bf16.mxu0 (!%p270_p2), %vm1205_vm0, %v1204_v1  ;;  %s1207_s18 = smov (!%p270_p2), 120   ;;  %s1208_s19 = smov (!%p270_p2), 88   ;;  %vm506_vm4 = vcmask (!%p270_p2), 60416   ;;  %vm626_vm5 = vcmask (!%p270_p2), 126016   ;;  %vm745_vm6 = vcmask (!%p270_p2), 191616   ;;  %vm864_vm7 = vcmask (!%p270_p2), 257216  }
   0x8   : > { %1088 = vmatprep.subr.bf16.mxu0 (!%p270_p2), %v1204_v1  ;;  %1096 = vmatprep.mubr.msk.bf16.mxu1 (!%p270_p2), %vm1205_vm0, %v1204_v1  ;;  %s1209_s20 = smov (!%p270_p2), 80   ;;  %s1210_s21 = smov (!%p270_p2), 112   ;;  %vm966_vm8 = vcmask (!%p270_p2), 257024  }
   0x9   : > { %s1211_s22 = smov (!%p270_p2), 72   ;;  %s1212_s23 = smov (!%p270_p2), 104  }
   0xa   : > { %s1213_s29 = smov (!%p270_p2), 56   ;;  %s1214_s30 = smov (!%p270_p2), 64  }
   0xb   : > { %1089 = vmatpush3.bf16.msra.mxu0 (!%p270_p2), %v1175_v2  ;;  %s1215_s9 = smov (!%p270_p2), 40   ;;  %s1216_s10 = smov (!%p270_p2), 48  }
   0xc   : > { %1100 = vmatprep.subr.bf16.mxu0 (!%p270_p2), %v1204_v1  ;;  %s1217_s12 = smov (!%p270_p2), 8  }
   0xd   : > { %s1401_s28 = smov (!%p304_p3, %s1030_s28), 1 }
   0xe   : > { %s1035_s11 = sshll.u32 %s1401_s28, 2  ;;  %s310_s26 = scalar_lea.vmem %s1392_s1, %s1401_s28 }
   0xf   : > { %s307_s14 = scalar_lea.vmem %s1391_s0, %s1035_s11  ;;  %v1041_v24 = vld [vmem:[%s310_s26] ss:$0 sm:$0xff] }
  0x10   : > { %v1295_v3 = vld [vmem:[%s307_s14] sm:$0xf] }
  0x11   : > { %1091 = vmatmul.mubr.msk.bf16.vlgmr.msra.gmra.mrb[0].mxu0 %vm340_vm1, %v1295_v3 }
  0x12   : > { %1102 = vmatprep.mubr.msk.bf16.mxu0 %vm1205_vm0, %v1204_v1 }
  0xe4   : > { %v378_v5 = vpop.f32.mrb[0].mxu0 }
  0xe5   : > { %v379_v6 = vadd.f32 %v1037_v4, %v378_v5  ;;  %v1092_v7 = vpop.f32.mrb[1].mxu0 }
  0xe6   : > { %v381_v8 = vpop.f32.mrb[2].mxu0 }
  0xe7   : > { %v384_v9 = vmul.f32 0.35355338, %v379_v6  ;;  %v1304_v10 = vpack.c.bf16 %v379_v6, %v379_v6  ;;  %v1093_v11 = vpop.f32.mrb[3].mxu0 }
  0xe9   : > { %v385_v12 = vpack.c.bf16 %v384_v9, %v384_v9  ;;  %395 = vrot.lane.b32.xlu0 %v1304_v10, %s1206_s17  ;;  %s1218_s17 = smov 16  }
  0xeb   : > { %509 = vrot.lane.b32.xlu1 %v385_v12, %s1207_s18  ;;  %s1219_s18 = smov 24  }
  0xed   : > { %511 = vrot.lane.b32.xlu0 %v1304_v10, %s1208_s19 }
  0xef   : > { %630 = vrot.lane.b32.xlu1 %v1304_v10, %s1209_s20 }
  0xf1   : > { %628 = vrot.lane.b32.xlu0 %v385_v12, %s1210_s21 }
  0xf3   : > { %749 = vrot.lane.b32.xlu1 %v1304_v10, %s1211_s22 }
  0xf5   : > { %747 = vrot.lane.b32.xlu0 %v385_v12, %s1212_s23 }
 0x15b   : > { %v396_v13 = vpop.permute.xlu0 %395 }
 0x15c   : > { %v402_v14 = vsel %vm397_vm2, %v396_v13, 0 }
 0x15d   : > { %1095 = vmatpush3.bf16.xpose.msra.mxu1 %v402_v14  ;;  %v510_v16 = vpop.permute.xlu1 %509 }
 0x15e   : > { %1106 = vmatprep.subr.bf16.mxu1 %v1204_v1 }
 0x15f   : > { %v512_v15 = vpop.permute.xlu0 %511 }
 0x160   : > { %v517_v17 = vsel %vm397_vm2, %v512_v15, 0 }
 0x161   : > { %v631_v18 = vpop.permute.xlu1 %630 }
 0x162   : > { %v636_v19 = vsel %vm397_vm2, %v631_v18, 0 }
 0x163   : > { %v629_v21 = vpop.permute.xlu0 %628 }
 0x164   : > { %1097 = vmatmul.mubr.msk.bf16.vlgmr.msra.gmra.mrb[0].mxu1 %vm397_vm2, %v385_v12 }
 0x165   : > { %1107 = vmatpush3.bf16.xpose.msra.mxu1 %v517_v17  ;;  %1108 = vmatprep.mubr.msk.bf16.mxu1 %vm1205_vm0, %v1204_v1  ;;  %v750_v20 = vpop.permute.xlu1 %749 }
 0x166   : > { %1118 = vmatprep.subr.bf16.mxu1 %v1204_v1  ;;  %v755_v22 = vsel %vm397_vm2, %v750_v20, 0 }
 0x167   : > { %v748_v23 = vpop.permute.xlu0 %747 }
 0x16c   : > { %1109 = vmatmul.mubr.msk.bf16.vlgmr.msra.gmra.mrb[4].mxu1 %vm397_vm2, %v510_v16 }
 0x16d   : > { %1119 = vmatpush3.bf16.xpose.msra.mxu1 %v636_v19  ;;  %1120 = vmatprep.mubr.msk.bf16.mxu1 %vm1205_vm0, %v1204_v1 }
 0x16e   : > { %1130 = vmatprep.subr.bf16.mxu1 %v1204_v1 }
 0x174   : > { %1121 = vmatmul.mubr.msk.bf16.vlgmr.msra.gmra.mrb[8].mxu1 %vm397_vm2, %v629_v21 }
 0x175   : > { %1131 = vmatpush3.bf16.xpose.msra.mxu1 %v755_v22  ;;  %1132 = vmatprep.mubr.msk.bf16.mxu1 %vm1205_vm0, %v1204_v1 }
 0x176   : > { %1142 = vmatprep.subr.bf16.mxu1 %v1204_v1 }
 0x17c   : > { %1133 = vmatmul.mubr.msk.bf16.vlgmr.msra.gmra.mrb[12].mxu1 %vm397_vm2, %v748_v23 }
 0x17d   : > { %1146 = vmatprep.mubr.msk.bf16.mxu1 %vm1205_vm0, %v1204_v1 }
 0x237   : > { %v438_v25 = vpop.f32.mrb[0].mxu1 }
 0x238   : > { %v439_v26 = vadd.f32 %v1041_v24, %v438_v25  ;;  %v1098_v27 = vpop.f32.mrb[1].mxu1 }
 0x239   : > { %v441_v28 = vpop.f32.mrb[2].mxu1 }
 0x23a   : > { %v1099_v29 = vpop.f32.mrb[3].mxu1  ;;  %v444_v30 = vsel %vm397_vm2, %v439_v26, -inf }
 0x23b   : > { %445 = vmax.xlane.f32.xlu1 %v444_v30 }
 0x23f   : > { %v553_v31 = vpop.f32.mrb[4].mxu1 }
 0x240   : > { %v554_v32 = vadd.f32 %v1041_v24, %v553_v31  ;;  %v1110_v33 = vpop.f32.mrb[5].mxu1 }
 0x241   : > { %v556_v34 = vpop.f32.mrb[6].mxu1 }
 0x242   : > { %v1111_v35 = vpop.f32.mrb[7].mxu1  ;;  %v559_v36 = vsel %vm397_vm2, %v554_v32, -inf }
 0x243   : > { %560 = vmax.xlane.f32.xlu0 %v559_v36 }
 0x247   : > { %v672_v37 = vpop.f32.mrb[8].mxu1 }
 0x248   : > { %v673_v38 = vadd.f32 %v1041_v24, %v672_v37  ;;  %v1122_v39 = vpop.f32.mrb[9].mxu1 }
 0x249   : > { %v675_v40 = vpop.f32.mrb[10].mxu1 }
 0x24a   : > { %v1123_v41 = vpop.f32.mrb[11].mxu1  ;;  %v678_v42 = vsel %vm397_vm2, %v673_v38, -inf }
 0x24b   : > { %679 = vmax.xlane.f32.xlu0 %v678_v42  ;;  %v1176_v41 = vld [vmem:[%s1395_s4] sm:$0xff]   ;;  %v1177_v42 = vld [vmem:[%s1395_s4 + $0x8] sm:$0xff]  }
 0x24c   : > { %1143 = vmatpush3.bf16.msra.mxu1 %v1176_v41 }
 0x24d   : > { %1144 = vmatprep.subr.bf16.mxu1 %v1204_v1 }
 0x24f   : > { %v791_v43 = vpop.f32.mrb[12].mxu1 }
 0x250   : > { %v792_v44 = vadd.f32 %v1041_v24, %v791_v43  ;;  %v1134_v45 = vpop.f32.mrb[13].mxu1  ;;  %1145 = vmatpush3.bf16.msra.mxu1 %v1177_v42 }
 0x251   : > { %v794_v46 = vpop.f32.mrb[14].mxu1 }
 0x252   : > { %v1135_v47 = vpop.f32.mrb[15].mxu1  ;;  %v797_v48 = vsel %vm397_vm2, %v792_v44, -inf }
 0x253   : > { %798 = vmax.xlane.f32.xlu1 %v797_v48 }
 0x2c8   : > { %v446_v49 = vpop.xlane.xlu1 %445 }
 0x2c9   : > { %v447_v50 = vsub.f32 %v439_v26, %v446_v49 }
 0x2cb   : > { %v448_v51 = vmul.f32 1.442695, %v447_v50 }
 0x2cd   : > { %1178 = vpow2.f32 %v448_v51 }
 0x2d0   : > { %v561_v52 = vpop.xlane.xlu0 %560 }
 0x2d1   : > { %v562_v53 = vsub.f32 %v554_v32, %v561_v52 }
 0x2d3   : > { %v563_v54 = vmul.f32 1.442695, %v562_v53 }
 0x2d5   : > { %1180 = vpow2.f32 %v563_v54 }
 0x2d7   : > { %v1179_v55 = vpop.eup %1178 }
 0x2d8   : > { %v680_v56 = vpop.xlane.xlu0 %679  ;;  %v450_v57 = vsel %vm397_vm2, %v1179_v55, 0.0 }
 0x2d9   : > { %v681_v58 = vsub.f32 %v673_v38, %v680_v56  ;;  %451 = vadd.xlane.f32.xlu0 %v450_v57  ;;  %v1053_v56 = vld [vmem:[%s1396_s5] ss:$0 sm:$0xff]  ;;  %v933_v57 = vunpack.c.l.bf16 %v1295_v3 }
 0x2db   : > { %v682_v59 = vmul.f32 1.442695, %v681_v58 }
 0x2dd   : > { %1182 = vpow2.f32 %v682_v59 }
 0x2df   : > { %v1181_v60 = vpop.eup %1180 }
 0x2e0   : > { %v565_v61 = vsel %vm397_vm2, %v1181_v60, 0.0  ;;  %v799_v0 = vpop.xlane.xlu1 %798 }
 0x2e1   : > { %566 = vadd.xlane.f32.xlu1 %v565_v61  ;;  %v800_v2 = vsub.f32 %v792_v44, %v799_v0 }
 0x2e3   : > { %v801_v4 = vmul.f32 1.442695, %v800_v2 }
 0x2e5   : > { %1184 = vpow2.f32 %v801_v4 }
 0x2e7   : > { %v1183_v62 = vpop.eup %1182 }
 0x2e8   : > { %v684_v63 = vsel %vm397_vm2, %v1183_v62, 0.0 }
 0x2e9   : > { %685 = vadd.xlane.f32.xlu0 %v684_v63 }
 0x2ef   : > { %v1185_v5 = vpop.eup %1184 }
 0x2f0   : > { %v803_v6 = vsel %vm397_vm2, %v1185_v5, 0.0 }
 0x2f2   : > { %571 = vrot.lane.b32.xlu1 %v1304_v10, %s1213_s29  ;;  %s314_s29 = scalar_lea.vmem %s1399_s8, %s1035_s11 }
 0x2ff   : > { %456 = vrot.lane.b32.xlu0 %v1304_v10, %s1214_s30 }
 0x303   : > { %809 = vrot.lane.b32.xlu0 %v1304_v10, %s1215_s9 }
 0x316   : > { %804 = vadd.xlane.f32.xlu1 %v803_v6 }
 0x327   : > { %690 = vrot.lane.b32.xlu1 %v1304_v10, %s1216_s10 }
 0x366   : > { %v452_v7 = vpop.xlane.xlu0 %451 }
 0x367   : > { %1186 = vrcp.f32 %v452_v7 }
 0x36e   : > { %v567_v8 = vpop.xlane.xlu1 %566 }
 0x36f   : > { %1188 = vrcp.f32 %v567_v8 }
 0x371   : > { %v1187_v9 = vpop.eup %1186 }
 0x372   : > { %v454_v12 = vmul.f32 %v1187_v9, %v1179_v55  ;;  %v572_v15 = vpop.permute.xlu1 %571 }
 0x373   : > { %v577_v18 = vsel %vm461_vm3, %v572_v15, 0 }
 0x374   : > { %v455_v16 = vpack.c.bf16 %v454_v12, %v454_v12  ;;  %v1057_v12 = vld [vmem:[%s1397_s6] ss:$0 sm:$0xff] }
 0x376   : > { %v686_v11 = vpop.xlane.xlu0 %685 }
 0x377   : > { %1190 = vrcp.f32 %v686_v11 }
 0x379   : > { %v1189_v17 = vpop.eup %1188 }
 0x37a   : > { %v457_v13 = vpop.permute.xlu0 %456  ;;  %v569_v10 = vmul.f32 %v1189_v17, %v1181_v60 }
 0x37b   : > { %v463_v14 = vsel %vm461_vm3, %v457_v13, 0 }
 0x37c   : > { %1101 = vmatpush3.bf16.msra.mxu0 %v463_v14  ;;  %v570_v19 = vpack.c.bf16 %v569_v10, %v569_v10  ;;  %v1058_v14 = vld [vmem:[%s1398_s7] ss:$0 sm:$0xff] }
 0x37d   : > { %1112 = vmatprep.subr.bf16.mxu0 %v1204_v1 }
 0x37e   : > { %v810_v25 = vpop.permute.xlu0 %809 }
 0x37f   : > { %1103 = vmatmul.mubr.msk.bf16.vlgmr.msra.gmra.mrb[4].mxu0 %vm397_vm2, %v455_v16  ;;  %v815_v27 = vsel %vm461_vm3, %v810_v25, 0 }
 0x380   : > { %1113 = vmatpush3.bf16.msra.mxu0 %v577_v18  ;;  %1114 = vmatprep.mubr.msk.bf16.mxu0 %vm1205_vm0, %v1204_v1 }
 0x381   : > { %1124 = vmatprep.subr.bf16.mxu0 %v1204_v1  ;;  %v1191_v20 = vpop.eup %1190 }
 0x382   : > { %v688_v22 = vmul.f32 %v1191_v20, %v1183_v62 }
 0x384   : > { %v689_v26 = vpack.c.bf16 %v688_v22, %v688_v22 }
 0x387   : > { %1115 = vmatmul.mubr.msk.bf16.vlgmr.msra.gmra.mrb[8].mxu0 %vm397_vm2, %v570_v19 }
 0x388   : > { %1126 = vmatprep.mubr.msk.bf16.mxu0 %vm1205_vm0, %v1204_v1 }
 0x3a3   : > { %v805_v21 = vpop.xlane.xlu1 %804 }
 0x3a4   : > { %1192 = vrcp.f32 %v805_v21 }
 0x3a7   : > { %v691_v23 = vpop.permute.xlu1 %690 }
 0x3a8   : > { %v696_v24 = vsel %vm461_vm3, %v691_v23, 0 }
 0x3a9   : > { %1125 = vmatpush3.bf16.msra.mxu0 %v696_v24 }
 0x3aa   : > { %1136 = vmatprep.subr.bf16.mxu0 %v1204_v1 }
 0x3ac   : > { %1127 = vmatmul.mubr.msk.bf16.vlgmr.msra.gmra.mrb[12].mxu0 %vm397_vm2, %v689_v26 }
 0x3ad   : > { %1137 = vmatpush3.bf16.msra.mxu0 %v815_v27  ;;  %1138 = vmatprep.mubr.msk.bf16.mxu0 %vm1205_vm0, %v1204_v1 }
 0x3ae   : > { %v1193_v28 = vpop.eup %1192 }
 0x3af   : > { %v807_v29 = vmul.f32 %v1193_v28, %v1185_v5 }
 0x3b1   : > { %v808_v30 = vpack.c.bf16 %v807_v29, %v807_v29 }
 0x3b4   : > { %1139 = vmatmul.mubr.msk.bf16.vlgmr.msra.gmra.mrb[16].mxu0 %vm397_vm2, %v808_v30 }
 0x452   : > { %v499_v31 = vpop.f32.mrb[4].mxu0 }
 0x453   : > { %v505_v32 = vpack.c.bf16 %v499_v31, %v499_v31  ;;  %v1104_v33 = vpop.f32.mrb[5].mxu0 }
 0x454   : > { %v502_v34 = vpop.f32.mrb[6].mxu0 }
 0x455   : > { %507 = vst.msk [vmem:[#allocation2] sm:$0xf] %vm506_vm4, %v505_v32  ;;  %v1105_v35 = vpop.f32.mrb[7].mxu0 }
 0x45a   : > { %v613_v36 = vpop.f32.mrb[8].mxu0 }
 0x45b   : > { %v1061_v37 = vpack.c.bf16 %v613_v36, %v613_v36  ;;  %v1116_v38 = vpop.f32.mrb[9].mxu0 }
 0x45c   : > { %v616_v39 = vpop.f32.mrb[10].mxu0 }
 0x45d   : > { %623 = vrot.lane.b32.xlu1 %v1061_v37, %s1217_s12  ;;  %v1117_v40 = vpop.f32.mrb[11].mxu0 }
 0x47f   : > { %v732_v43 = vpop.f32.mrb[12].mxu0 }
 0x480   : > { %v1062_v44 = vpack.c.bf16 %v732_v43, %v732_v43  ;;  %v1128_v45 = vpop.f32.mrb[13].mxu0 }
 0x481   : > { %v735_v46 = vpop.f32.mrb[14].mxu0 }
 0x482   : > { %742 = vrot.lane.b32.xlu0 %v1062_v44, %s1218_s17  ;;  %v1129_v47 = vpop.f32.mrb[15].mxu0 }
 0x487   : > { %v851_v48 = vpop.f32.mrb[16].mxu0 }
 0x488   : > { %v1063_v49 = vpack.c.bf16 %v851_v48, %v851_v48  ;;  %v1140_v50 = vpop.f32.mrb[17].mxu0 }
 0x489   : > { %v854_v51 = vpop.f32.mrb[18].mxu0 }
 0x48a   : > { %861 = vrot.lane.b32.xlu1 %v1063_v49, %s1219_s18  ;;  %v1141_v52 = vpop.f32.mrb[19].mxu0 }
 0x4cf   : > { %v624_v53 = vpop.permute.xlu1 %623 }
 0x4d0   : > { %627 = vst.msk [vmem:[#allocation2] sm:$0xf] %vm626_vm5, %v624_v53 }
 0x4f4   : > { %v743_v54 = vpop.permute.xlu0 %742 }
 0x4f5   : > { %746 = vst.msk [vmem:[#allocation2] sm:$0xf] %vm745_vm6, %v743_v54 }
 0x4fc   : > { %v862_v1 = vpop.permute.xlu1 %861 }
 0x4fd   : > { %865 = vst.msk [vmem:[#allocation2] sm:$0xf] %vm864_vm7, %v862_v1 }
 0x504   : > { %v866_v55 = vld [vmem:[#allocation2] sm:$0xf] }
 0x505   : > { %1147 = vmatmul.mubr.msk.bf16.vlgmr.msra.gmra.mrb[16].mxu1 %vm340_vm1, %v866_v55 }
 0x5d8   : > { %v927_v58 = vpop.f32.mrb[16].mxu1 }
 0x5d9   : > { %v928_v59 = vadd.f32 %v1053_v56, %v927_v58  ;;  %v1148_v60 = vpop.f32.mrb[17].mxu1 }
 0x5da   : > { %v930_v61 = vpop.f32.mrb[18].mxu1 }
 0x5db   : > { %v1149_v62 = vpop.f32.mrb[19].mxu1  ;;  %v934_v63 = vadd.f32 %v933_v57, %v928_v59 }
 0x5dd   : > { %v937_v0 = vsel %vm340_vm1, %v934_v63, 0.0 }
 0x5de   : > { %938 = vadd.xlane.f32.xlu0 %v937_v0 }
 0x66b   : > { %v939_v2 = vpop.xlane.xlu0 %938 }
 0x66c   : > { %v941_v4 = vmul.f32 0.03125, %v939_v2 }
 0x66e   : > { %v942_v5 = vsub.f32 %v934_v63, %v941_v4 }
 0x670   : > { %v943_v6 = vmul.f32 %v942_v5, %v942_v5 }
 0x672   : > { %v944_v7 = vsel %vm340_vm1, %v943_v6, 0.0 }
 0x673   : > { %945 = vadd.xlane.f32.xlu1 %v944_v7 }
 0x700   : > { %v946_v8 = vpop.xlane.xlu1 %945 }
 0x701   : > { %v947_v9 = vmul.f32 0.03125, %v946_v8 }
 0x703   : > { %v948_v3 = vadd.f32 1e-12, %v947_v9 }
 0x705   : > { %1194 = vrsqrt.f32 %v948_v3 }
 0x70f   : > { %v1195_v11 = vpop.eup %1194 }
 0x710   : > { %v950_v13 = vmul.f32 %v1195_v11, %v942_v5 }
 0x712   : > { %v957_v15 = vmul.f32 %v1057_v12, %v950_v13 }
 0x714   : > { %v964_v16 = vadd.f32 %v1058_v14, %v957_v15 }
 0x716   : > { %v965_v17 = vpack.c.bf16 %v964_v16, %v964_v16 }
 0x718   : > { %967 = vst.msk [vmem:[%s314_s29] sm:$0xf] %vm966_vm8, %v965_v17 }
 0x719 PF: > { %s18_s27 = sadd.s32 1, %s1202_s27  }
 0x71a   : > { %p15_p4 = scmp.ge.s32.totalorder %s18_s27, 4  }
 0x71c   :  { %17 = sbr.rel (!%p15_p4) target bundleno = 1 (0x1), region = 85 }

</bundles_post_ra>
